<compile_context>
chip_gen: v7x
topology: tpu7x:2x2x1
jax: 0.10.0
libtpu: 0.0.40
codegen_flags: <defaults>
</compile_context>

<pallas_src>
import functools

import jax
import jax.numpy as jnp
from jax.experimental import pallas as pl
from jax.experimental.pallas import tpu as pltpu


def _round_up(x, m):
    return ((x + m - 1) // m) * m


def _classifier_kernel(x_ref, w1_ref, b1_ref, w2_ref, b2_ref, wo_ref, bo_ref,
                       o_ref):
    """One batch-tile of the MLP: (Linear+ReLU) x2 -> Linear -> log_softmax."""
    # In-kernel bf16 cast of the f32 activations (feedback #1).
    x = x_ref[...].astype(jnp.bfloat16)                        # (bt, in)

    # Hidden layer 1: ReLU(x @ W1 + b1)  (bf16 MXU, f32 accumulate/elementwise)
    h = jnp.dot(x, w1_ref[...], preferred_element_type=jnp.float32)
    h = jnp.maximum(h + b1_ref[...], 0.0)

    # Hidden layer 2: ReLU(h @ W2 + b2)
    h = jnp.dot(h.astype(jnp.bfloat16), w2_ref[...],
                preferred_element_type=jnp.float32)
    h = jnp.maximum(h + b2_ref[...], 0.0)

    # Output layer: logits = h @ Wo + bo.  Wo is zero-padded to 128 lanes and
    # bo padded with -1e30 so padded columns never win the max nor add to the
    # softmax sum (exp underflows to exactly 0 in f32).
    logits = jnp.dot(h.astype(jnp.bfloat16), wo_ref[...],
                     preferred_element_type=jnp.float32)
    logits = logits + bo_ref[...]

    # log_softmax along the feature axis (PyTorch dim=1 for 2-D input).
    m = jnp.max(logits, axis=-1, keepdims=True)
    shifted = logits - m
    lse = jnp.log(jnp.sum(jnp.exp(shifted), axis=-1, keepdims=True))
    logp = shifted - lse

    # Narrow store: only the real output columns (feedback #3, option b).
    out_size = o_ref.shape[-1]
    o_ref[...] = logp[:, :out_size].astype(o_ref.dtype)


def prepare_params(w1, b1, w2, b2, wo, bo):
    """One-time parameter prep (feedback #7, #9): pad hidden/output dims to
    128 with zeros (numerics-neutral: padded hidden units are exactly 0 after
    ReLU and padded K rows are zero), pad the output bias with -1e30 for the
    extra lanes, cast weights to bf16 and keep biases f32.

    Weights come in already transposed to (in, out); biases as (1, out).
    Returns (packed param tuple, out_size).
    """
    in_size, h1 = w1.shape
    h2 = w2.shape[1]
    out_size = wo.shape[1]
    h1p = _round_up(h1, 128)
    h2p = _round_up(h2, 128)
    n_pad = _round_up(out_size, 128)

    w1_p = jnp.zeros((in_size, h1p), jnp.float32).at[:, :h1].set(w1)
    b1_p = jnp.zeros((1, h1p), jnp.float32).at[:, :h1].set(b1)
    w2_p = jnp.zeros((h1p, h2p), jnp.float32).at[:h1, :h2].set(w2)
    b2_p = jnp.zeros((1, h2p), jnp.float32).at[:, :h2].set(b2)
    wo_p = jnp.zeros((h2p, n_pad), jnp.float32).at[:h2, :out_size].set(wo)
    bo_p = jnp.full((1, n_pad), -1e30, jnp.float32).at[:, :out_size].set(bo)

    params = (w1_p.astype(jnp.bfloat16), b1_p,
              w2_p.astype(jnp.bfloat16), b2_p,
              wo_p.astype(jnp.bfloat16), bo_p)
    return params, out_size


@functools.partial(jax.jit, static_argnames=("out_size", "batch_tile"))
def classifier_forward(x, w1b, b1f, w2b, b2f, wob, bof, *, out_size,
                       batch_tile=512):
    """Runs the Classifier forward pass as a single Pallas kernel.

    x: (B, input_size) float32
    w1b/w2b/wob: pre-padded bf16 (in, out) weights; b1f/b2f/bof: f32 (1, out).
    returns: (B, out_size) float32 log-probabilities.
    """
    assert batch_tile % 16 == 0, "batch_tile must be a multiple of 16"
    B, in_size = x.shape
    h1p = w1b.shape[1]
    h2p = w2b.shape[1]
    n_pad = wob.shape[1]

    # Batch tiling; bt is 16-aligned (bf16 sublane packing of intermediates).
    bt = min(batch_tile, _round_up(B, 16))
    b_pad = _round_up(B, bt)
    if b_pad != B:
        # Ragged-batch fallback only; costs one extra HBM pass over x.
        # Choose batch sizes / batch_tile so B % bt == 0 to skip this.
        x = jnp.pad(x, ((0, b_pad - B), (0, 0)))
    grid = (b_pad // bt,)

    full = lambda i: (0, 0)  # weights / biases: same (only) block every step

    cost = pl.CostEstimate(
        flops=2 * b_pad * (in_size * h1p + h1p * h2p + h2p * n_pad),
        transcendentals=b_pad * (n_pad + 1),          # exp + log
        bytes_accessed=(b_pad * in_size * 4
                        + w1b.size * 2 + w2b.size * 2 + wob.size * 2
                        + b1f.size * 4 + b2f.size * 4 + bof.size * 4
                        + b_pad * out_size * 4),
    )

    out = pl.pallas_call(
        _classifier_kernel,
        out_shape=jax.ShapeDtypeStruct((b_pad, out_size), jnp.float32),
        grid_spec=pltpu.PrefetchScalarGridSpec(
            num_scalar_prefetch=0,
            grid=grid,
            in_specs=[
                pl.BlockSpec((bt, in_size), lambda i: (i, 0)),
                pl.BlockSpec(w1b.shape, full),
                pl.BlockSpec(b1f.shape, full),
                pl.BlockSpec(w2b.shape, full),
                pl.BlockSpec(b2f.shape, full),
                pl.BlockSpec(wob.shape, full),
                pl.BlockSpec(bof.shape, full),
            ],
            out_specs=pl.BlockSpec((bt, out_size), lambda i: (i, 0)),
        ),
        compiler_params=pltpu.CompilerParams(
            dimension_semantics=("parallel",)),
        cost_estimate=cost,
    )(x, w1b, b1f, w2b, b2f, wob, bof)

    return out if b_pad == B else out[:B]


def _init_linear(key, fan_in, fan_out):
    """Deterministic Kaiming-uniform-style init (like nn.Linear's default).

    Returns weight already transposed to (in, out) and bias as (1, out).
    """
    kw, kb = jax.random.split(key)
    bound = 1.0 / jnp.sqrt(fan_in)
    w = jax.random.uniform(kw, (fan_in, fan_out), jnp.float32, -bound, bound)
    b = jax.random.uniform(kb, (1, fan_out), jnp.float32, -bound, bound)
    return w, b


def reference_forward_f32(x, w1, b1, w2, b2, wo, bo):
    """Plain-JAX f32 reference mirroring the PyTorch module (drops=None)."""
    h = jax.nn.relu(x @ w1 + b1)
    h = jax.nn.relu(h @ w2 + b2)
    logits = h @ wo + bo
    return jax.nn.log_softmax(logits, axis=1)


def reference_forward_bf16(x, w1, b1, w2, b2, wo, bo):
    """Reference that mirrors the kernel's bf16-operand / f32-accum math."""
    def dot(a, b):
        return jnp.dot(a.astype(jnp.bfloat16), b.astype(jnp.bfloat16),
                       preferred_element_type=jnp.float32)
    h = jnp.maximum(dot(x, w1) + b1, 0.0)
    h = jnp.maximum(dot(h, w2) + b2, 0.0)
    logits = dot(h, wo) + bo
    return jax.nn.log_softmax(logits, axis=1)


if __name__ == "__main__":
    # Classifier(input_size=32, output_size=10, hidden_layers=[64, 48])
    input_size, output_size = 32, 10
    hidden_layers = [64, 48]
    batch = 2048         # 4 tiles of 512 -> grid=(4,): 2 steps per TC on v7x
    batch_tile = 512

    root = jax.random.PRNGKey(0)
    kx, k1, k2, k3 = jax.random.split(root, 4)

    x = jax.random.normal(kx, (batch, input_size), jnp.float32)
    w1, b1 = _init_linear(k1, input_size, hidden_layers[0])
    w2, b2 = _init_linear(k2, hidden_layers[0], hidden_layers[1])
    wo, bo = _init_linear(k3, hidden_layers[1], output_size)

    # One-time parameter prep (padding + bf16 cast) outside the hot path.
    params, out_size = prepare_params(w1, b1, w2, b2, wo, bo)

    out = classifier_forward(x, *params, out_size=out_size,
                             batch_tile=batch_tile)
    out = jax.block_until_ready(out)
    assert out.shape == (batch, output_size)

    # Match the bf16-mirrored reference tightly (zero-padding is exact).
    ref_bf16 = reference_forward_bf16(x, w1, b1, w2, b2, wo, bo)
    assert jnp.allclose(out, ref_bf16, atol=1e-4, rtol=1e-4), \
        "mismatch vs bf16-mirrored reference"

    # Semantics sanity vs the full-f32 PyTorch-equivalent reference.
    ref_f32 = reference_forward_f32(x, w1, b1, w2, b2, wo, bo)
    assert jnp.allclose(out, ref_f32, atol=5e-2, rtol=5e-2), \
        "mismatch vs f32 reference"

    # log_softmax rows should sum to ~1 in prob space.
    assert jnp.allclose(jnp.sum(jnp.exp(out), axis=1), 1.0, atol=1e-4)

    print("KERNEL_OK")
</pallas_src>

<mosaic_0001>
module attributes {stable_mosaic.version = 11 : i64} {
  func.func @_classifier_kernel(%arg0: i32, %arg1: memref<512x32xf32, #tpu.memory_space<vmem>>, %arg2: memref<32x128xbf16, #tpu.memory_space<vmem>>, %arg3: memref<1x128xf32, #tpu.memory_space<vmem>>, %arg4: memref<128x128xbf16, #tpu.memory_space<vmem>>, %arg5: memref<1x128xf32, #tpu.memory_space<vmem>>, %arg6: memref<128x128xbf16, #tpu.memory_space<vmem>>, %arg7: memref<1x128xf32, #tpu.memory_space<vmem>>, %arg8: memref<512x10xf32, #tpu.memory_space<vmem>>) attributes {dimension_semantics = [#tpu.dimension_semantics<parallel>], iteration_bounds = array<i64: 4>, scalar_prefetch = 0 : i64, scratch_operands = 0 : i64, tpu.core_type = #tpu.core_type<tc>, window_params = [{transform_indices = @transform_0, window_bounds = array<i64: 512, 32>}, {pipeline_mode = #tpu.pipeline_mode<synchronous>, transform_indices = @transform_1, window_bounds = array<i64: 32, 128>}, {pipeline_mode = #tpu.pipeline_mode<synchronous>, transform_indices = @transform_2, window_bounds = array<i64: 1, 128>}, {pipeline_mode = #tpu.pipeline_mode<synchronous>, transform_indices = @transform_3, window_bounds = array<i64: 128, 128>}, {pipeline_mode = #tpu.pipeline_mode<synchronous>, transform_indices = @transform_4, window_bounds = array<i64: 1, 128>}, {pipeline_mode = #tpu.pipeline_mode<synchronous>, transform_indices = @transform_5, window_bounds = array<i64: 128, 128>}, {pipeline_mode = #tpu.pipeline_mode<synchronous>, transform_indices = @transform_6, window_bounds = array<i64: 1, 128>}, {transform_indices = @transform_7, window_bounds = array<i64: 512, 10>}]} {
    %c0 = arith.constant 0 : index
    %c0_0 = arith.constant 0 : index
    %0 = vector.load %arg1[%c0, %c0_0] : memref<512x32xf32, #tpu.memory_space<vmem>>, vector<512x32xf32>
    %1 = arith.truncf %0 : vector<512x32xf32> to vector<512x32xbf16>
    %c0_1 = arith.constant 0 : index
    %c0_2 = arith.constant 0 : index
    %2 = vector.load %arg2[%c0_1, %c0_2] : memref<32x128xbf16, #tpu.memory_space<vmem>>, vector<32x128xbf16>
    %cst = arith.constant dense<0.000000e+00> : vector<512x128xf32>
    %3 = tpu.matmul %1, %2, %cst {dimension_numbers = #tpu.dot_dimension_numbers<[1], [0], [0], [1], [0, 0, 1, 1], [], []>} : vector<512x32xbf16>, vector<32x128xbf16>, vector<512x128xf32> -> vector<512x128xf32>
    %c0_3 = arith.constant 0 : index
    %c0_4 = arith.constant 0 : index
    %4 = vector.load %arg3[%c0_3, %c0_4] : memref<1x128xf32, #tpu.memory_space<vmem>>, vector<1x128xf32>
    %5 = vector.broadcast %4 : vector<1x128xf32> to vector<512x128xf32>
    %6 = arith.addf %3, %5 : vector<512x128xf32>
    %cst_5 = arith.constant 0.000000e+00 : f32
    %7 = vector.broadcast %cst_5 : f32 to vector<512x128xf32>
    %8 = arith.maximumf %6, %7 : vector<512x128xf32>
    %9 = arith.truncf %8 : vector<512x128xf32> to vector<512x128xbf16>
    %c0_6 = arith.constant 0 : index
    %c0_7 = arith.constant 0 : index
    %10 = vector.load %arg4[%c0_6, %c0_7] : memref<128x128xbf16, #tpu.memory_space<vmem>>, vector<128x128xbf16>
    %cst_8 = arith.constant dense<0.000000e+00> : vector<512x128xf32>
    %11 = tpu.matmul %9, %10, %cst_8 {dimension_numbers = #tpu.dot_dimension_numbers<[1], [0], [0], [1], [0, 0, 1, 1], [], []>} : vector<512x128xbf16>, vector<128x128xbf16>, vector<512x128xf32> -> vector<512x128xf32>
    %c0_9 = arith.constant 0 : index
    %c0_10 = arith.constant 0 : index
    %12 = vector.load %arg5[%c0_9, %c0_10] : memref<1x128xf32, #tpu.memory_space<vmem>>, vector<1x128xf32>
    %13 = vector.broadcast %12 : vector<1x128xf32> to vector<512x128xf32>
    %14 = arith.addf %11, %13 : vector<512x128xf32>
    %cst_11 = arith.constant 0.000000e+00 : f32
    %15 = vector.broadcast %cst_11 : f32 to vector<512x128xf32>
    %16 = arith.maximumf %14, %15 : vector<512x128xf32>
    %17 = arith.truncf %16 : vector<512x128xf32> to vector<512x128xbf16>
    %c0_12 = arith.constant 0 : index
    %c0_13 = arith.constant 0 : index
    %18 = vector.load %arg6[%c0_12, %c0_13] : memref<128x128xbf16, #tpu.memory_space<vmem>>, vector<128x128xbf16>
    %cst_14 = arith.constant dense<0.000000e+00> : vector<512x128xf32>
    %19 = tpu.matmul %17, %18, %cst_14 {dimension_numbers = #tpu.dot_dimension_numbers<[1], [0], [0], [1], [0, 0, 1, 1], [], []>} : vector<512x128xbf16>, vector<128x128xbf16>, vector<512x128xf32> -> vector<512x128xf32>
    %c0_15 = arith.constant 0 : index
    %c0_16 = arith.constant 0 : index
    %20 = vector.load %arg7[%c0_15, %c0_16] : memref<1x128xf32, #tpu.memory_space<vmem>>, vector<1x128xf32>
    %21 = vector.broadcast %20 : vector<1x128xf32> to vector<512x128xf32>
    %22 = arith.addf %19, %21 : vector<512x128xf32>
    %cst_17 = arith.constant dense<0xFF800000> : vector<512xf32>
    %23 = vector.multi_reduction <maximumf>, %22, %cst_17 [1] : vector<512x128xf32> to vector<512xf32>
    %24 = vector.shape_cast %23 : vector<512xf32> to vector<512x1xf32>
    %25 = vector.broadcast %24 : vector<512x1xf32> to vector<512x128xf32>
    %26 = arith.subf %22, %25 : vector<512x128xf32>
    %27 = math.exp %26 : vector<512x128xf32>
    %cst_18 = arith.constant dense<0.000000e+00> : vector<512xf32>
    %28 = vector.multi_reduction <add>, %27, %cst_18 [1] : vector<512x128xf32> to vector<512xf32>
    %29 = vector.shape_cast %28 : vector<512xf32> to vector<512x1xf32>
    %30 = math.log %29 : vector<512x1xf32>
    %31 = vector.broadcast %30 : vector<512x1xf32> to vector<512x128xf32>
    %32 = arith.subf %26, %31 : vector<512x128xf32>
    %33 = vector.extract_strided_slice %32 {offsets = [0, 0], sizes = [512, 10], strides = [1, 1]} : vector<512x128xf32> to vector<512x10xf32>
    %c0_19 = arith.constant 0 : index
    %c0_20 = arith.constant 0 : index
    %34 = vector.load %arg8[%c0_19, %c0_20] : memref<512x10xf32, #tpu.memory_space<vmem>>, vector<512x10xf32>
    tpu.vector_store %arg8[%c0_19, %c0_20], %33 {strides = array<i32>} : memref<512x10xf32, #tpu.memory_space<vmem>>, vector<512x10xf32>,
    return
  }
  func.func @transform_0(%arg0: i32) -> (i32, i32) {
    %c0_i32 = arith.constant 0 : i32
    %c0_i32_0 = arith.constant 0 : i32
    return %arg0, %c0_i32 : i32, i32
  }
  func.func @transform_1(%arg0: i32) -> (i32, i32) {
    %c0_i32 = arith.constant 0 : i32
    %c0_i32_0 = arith.constant 0 : i32
    %c0_i32_1 = arith.constant 0 : i32
    return %c0_i32, %c0_i32_0 : i32, i32
  }
  func.func @transform_2(%arg0: i32) -> (i32, i32) {
    %c0_i32 = arith.constant 0 : i32
    %c0_i32_0 = arith.constant 0 : i32
    %c0_i32_1 = arith.constant 0 : i32
    return %c0_i32, %c0_i32_0 : i32, i32
  }
  func.func @transform_3(%arg0: i32) -> (i32, i32) {
    %c0_i32 = arith.constant 0 : i32
    %c0_i32_0 = arith.constant 0 : i32
    %c0_i32_1 = arith.constant 0 : i32
    return %c0_i32, %c0_i32_0 : i32, i32
  }
  func.func @transform_4(%arg0: i32) -> (i32, i32) {
    %c0_i32 = arith.constant 0 : i32
    %c0_i32_0 = arith.constant 0 : i32
    %c0_i32_1 = arith.constant 0 : i32
    return %c0_i32, %c0_i32_0 : i32, i32
  }
  func.func @transform_5(%arg0: i32) -> (i32, i32) {
    %c0_i32 = arith.constant 0 : i32
    %c0_i32_0 = arith.constant 0 : i32
    %c0_i32_1 = arith.constant 0 : i32
    return %c0_i32, %c0_i32_0 : i32, i32
  }
  func.func @transform_6(%arg0: i32) -> (i32, i32) {
    %c0_i32 = arith.constant 0 : i32
    %c0_i32_0 = arith.constant 0 : i32
    %c0_i32_1 = arith.constant 0 : i32
    return %c0_i32, %c0_i32_0 : i32, i32
  }
  func.func @transform_7(%arg0: i32) -> (i32, i32) {
    %c0_i32 = arith.constant 0 : i32
    %c0_i32_0 = arith.constant 0 : i32
    return %arg0, %c0_i32 : i32, i32
  }
}

</mosaic_0001>

<bundles_post_ra>
// kernel: classifier_forward.1
= control target key start
LH: loop header
LB: loop body
LE: loop exit
PB: predicated region body
PF: predicated region fallthrough
CT: control target
= control target key end

     0   :  { %s3201_s24 = smov 0   ;;  %s4256_s0 = inlined_call_operand.vmem [shape: f32[2048,32], index: 0, kind: input, shape index: {}]   ;;  %s4257_s1 = inlined_call_operand.vmem [shape: bf16[32,128], index: 1, kind: input, shape index: {}]   ;;  %s4258_s2 = inlined_call_operand.vmem [shape: f32[1,128], index: 2, kind: input, shape index: {}]   ;;  %s4259_s3 = inlined_call_operand.vmem [shape: bf16[128,128], index: 3, kind: input, shape index: {}]   ;;  %s4260_s4 = inlined_call_operand.vmem [shape: f32[1,128], index: 4, kind: input, shape index: {}]   ;;  %s4261_s5 = inlined_call_operand.vmem [shape: bf16[128,128], index: 5, kind: input, shape index: {}]   ;;  %s4262_s6 = inlined_call_operand.vmem [shape: f32[1,128], index: 6, kind: input, shape index: {}]   ;;  %s4263_s7 = inlined_call_operand.vmem [shape: f32[2048,10], index: 7, kind: output, shape index: {}]  }
   0x1 LB: > { %s2461_s25 = sadd.s32 4294967295, %s3159_s24   ;;  %p2465_p0 = scmp.ge.s32.totalorder %s3159_s24, 1  ;;  %s3159_s24 = sphi %s3201_s24, %s17_s24  }
   0x2   : > { %p238_p1 = scmp.lt.s32.totalorder %s3159_s24, 5 }
   0x4   : > { %p239_p2 = pnand %p2465_p0, %p238_p1 }
   0x6   : > { %242 = sbr.rel (%p239_p2) target bundleno = 1126 (0x466), region = 48 }
   0xd   : > { %v2879_v0 = vld [vmem:[%s4257_s1] sm:$0xff]   ;;  %s2466_s28 = sshll.u32 %s2461_s25, 6  ;;  %v2880_v1 = vld [vmem:[%s4257_s1 + $0x8] sm:$0xff]   ;;  %vm402_vm0 = vcmask 261120   ;;  %v2883_v38 = vld [vmem:[%s4259_s3 + $0x10] sm:$0xff]   ;;  %vm2340_vm1 = vcmask 80896  }
   0xe   : > { %p271_p3 = scmp.lt.s32.totalorder %s2466_s28, 255  ;;  %2639 = vmatprep.subr.bf16.mxu0 %v2879_v0  ;;  %2867 = vmatprep.subr.bf16.mxu1 %v2879_v0  ;;  %v2881_v2 = vld [vmem:[%s4259_s3] sm:$0xff]   ;;  %v2882_v29 = vld [vmem:[%s4259_s3 + $0x8] sm:$0xff]   ;;  %v2884_v40 = vld [vmem:[%s4259_s3 + $0x18] sm:$0xff]  }
   0xf   : > { %2640 = vmatpush3.bf16.msra.mxu0 %v2879_v0  ;;  %2869 = vmatpush3.bf16.msra.mxu1 %v2879_v0  ;;  %v2885_v50 = vld [vmem:[%s4259_s3 + $0x20] sm:$0xff]   ;;  %v2886_v57 = vld [vmem:[%s4259_s3 + $0x28] sm:$0xff]  }
  0x10   : > { %s4337_s28 = smov (!%p271_p3, %s2466_s28), 255  ;;  %2641 = vmatprep.subr.bf16.mxu0 %v2880_v1  ;;  %2868 = vmatprep.subr.bf16.mxu1 %v2880_v1 }
  0x11   : > { %s2467_s10 = sshll.u32 %s4337_s28, 3 }
  0x12   : > { %s3226_s13 = scalar_lea.vmem %s4256_s0, %s2467_s10  ;;  %s4059_s12 = scalar_lea.vmem %s4263_s7, %s2467_s10 }
  0x13   : > { %2642 = vmatpush3.bf16.msra.mxu0 %v2880_v1  ;;  %v283_v3 = vld [vmem:[%s3226_s13] sm:$0xff]  ;;  %v284_v4 = vld [vmem:[%s3226_s13 + $0x8] sm:$0xff]  ;;  %v285_v5 = vld [vmem:[%s3226_s13 + $0x10] sm:$0xff]  ;;  %2870 = vmatpush3.bf16.msra.mxu1 %v2880_v1 }
  0x14   : > { %v347_v6 = vpack.c.bf16 %v284_v4, %v283_v3  ;;  %v286_v7 = vld [vmem:[%s3226_s13 + $0x18] sm:$0xff]  ;;  %v287_v8 = vld [vmem:[%s3226_s13 + $0x20] sm:$0xff]  ;;  %v288_v9 = vld [vmem:[%s3226_s13 + $0x28] sm:$0xff]  ;;  %2707 = vmatprep.subr.bf16.mxu1 %v2881_v2 }
  0x15   : > { %v348_v10 = vpack.c.bf16 %v286_v7, %v285_v5  ;;  %v349_v11 = vpack.c.bf16 %v288_v9, %v287_v8  ;;  %v289_v12 = vld [vmem:[%s3226_s13 + $0x30] sm:$0xff]  ;;  %v290_v13 = vld [vmem:[%s3226_s13 + $0x38] sm:$0xff]  ;;  %v291_v14 = vld [vmem:[%s3226_s13 + $0x40] sm:$0xff] }
  0x16   : > { %2643 = vmatprep.mubr.msk.bf16.mxu0 %vm402_vm0, %v347_v6  ;;  %v292_v15 = vld [vmem:[%s3226_s13 + $0x48] sm:$0xff]  ;;  %v350_v16 = vpack.c.bf16 %v290_v13, %v289_v12  ;;  %v315_v18 = vld [vmem:[%s3226_s13 + $0x100] sm:$0xff]  ;;  %v317_v20 = vld [vmem:[%s3226_s13 + $0x110] sm:$0xff] }
  0x17   : > { %2644 = vmatmul.mubr.msk.bf16.vlgmr.msra.gmra.mrb[0].mxu0 %vm402_vm0, %v348_v10  ;;  %v351_v17 = vpack.c.bf16 %v292_v15, %v291_v14  ;;  %v316_v19 = vld [vmem:[%s3226_s13 + $0x108] sm:$0xff]  ;;  %v318_v21 = vld [vmem:[%s3226_s13 + $0x118] sm:$0xff]  ;;  %v319_v24 = vld [vmem:[%s3226_s13 + $0x120] sm:$0xff] }
  0x18   : > { %2647 = vmatprep.mubr.msk.bf16.mxu0 %vm402_vm0, %v349_v11  ;;  %v363_v22 = vpack.c.bf16 %v316_v19, %v315_v18  ;;  %v364_v23 = vpack.c.bf16 %v318_v21, %v317_v20  ;;  %v320_v25 = vld [vmem:[%s3226_s13 + $0x128] sm:$0xff]  ;;  %v293_v26 = vld [vmem:[%s3226_s13 + $0x50] sm:$0xff]  ;;  %v294_v27 = vld [vmem:[%s3226_s13 + $0x58] sm:$0xff] }
  0x19   : > { %v365_v28 = vpack.c.bf16 %v320_v25, %v319_v24  ;;  %v295_v30 = vld [vmem:[%s3226_s13 + $0x60] sm:$0xff]  ;;  %v296_v31 = vld [vmem:[%s3226_s13 + $0x68] sm:$0xff]  ;;  %v352_v32 = vpack.c.bf16 %v294_v27, %v293_v26  ;;  %v321_v33 = vld [vmem:[%s3226_s13 + $0x130] sm:$0xff] }
  0x1a   : > { %2675 = vmatprep.mubr.msk.bf16.mxu1 %vm402_vm0, %v363_v22  ;;  %v322_v34 = vld [vmem:[%s3226_s13 + $0x138] sm:$0xff]  ;;  %v353_v35 = vpack.c.bf16 %v296_v31, %v295_v30  ;;  %v323_v36 = vld [vmem:[%s3226_s13 + $0x140] sm:$0xff]  ;;  %v324_v37 = vld [vmem:[%s3226_s13 + $0x148] sm:$0xff] }
  0x1b   : > { %2676 = vmatmul.mubr.msk.bf16.vlgmr.msra.gmra.mrb[0].mxu1 %vm402_vm0, %v364_v23  ;;  %v366_v39 = vpack.c.bf16 %v322_v34, %v321_v33  ;;  %v297_v41 = vld [vmem:[%s3226_s13 + $0x70] sm:$0xff]  ;;  %v298_v42 = vld [vmem:[%s3226_s13 + $0x78] sm:$0xff]  ;;  %v299_v43 = vld [vmem:[%s3226_s13 + $0x80] sm:$0xff]  ;;  %v367_v44 = vpack.c.bf16 %v324_v37, %v323_v36 }
  0x1c   : > { %2679 = vmatprep.mubr.msk.bf16.mxu1 %vm402_vm0, %v365_v28  ;;  %2708 = vmatpush3.bf16.msra.mxu1 %v2881_v2  ;;  %v300_v45 = vld [vmem:[%s3226_s13 + $0x88] sm:$0xff]  ;;  %v325_v46 = vld [vmem:[%s3226_s13 + $0x150] sm:$0xff]  ;;  %v326_v47 = vld [vmem:[%s3226_s13 + $0x158] sm:$0xff]  ;;  %v354_v51 = vpack.c.bf16 %v298_v42, %v297_v41 }
  0x1d   : > { %2709 = vmatprep.subr.bf16.mxu1 %v2882_v29  ;;  %v327_v48 = vld [vmem:[%s3226_s13 + $0x160] sm:$0xff]  ;;  %v328_v49 = vld [vmem:[%s3226_s13 + $0x168] sm:$0xff]  ;;  %v355_v52 = vpack.c.bf16 %v300_v45, %v299_v43  ;;  %v301_v53 = vld [vmem:[%s3226_s13 + $0x90] sm:$0xff]  ;;  %v368_v54 = vpack.c.bf16 %v326_v47, %v325_v46 }
  0x1e   : > { %v369_v55 = vpack.c.bf16 %v328_v49, %v327_v48  ;;  %v302_v56 = vld [vmem:[%s3226_s13 + $0x98] sm:$0xff]  ;;  %v303_v58 = vld [vmem:[%s3226_s13 + $0xa0] sm:$0xff]  ;;  %v304_v59 = vld [vmem:[%s3226_s13 + $0xa8] sm:$0xff] }
  0x1f   : > { %2648 = vmatmul.mubr.msk.bf16.gmra.mrb[4].mxu0 %vm402_vm0, %v350_v16  ;;  %v356_v60 = vpack.c.bf16 %v302_v56, %v301_v53  ;;  %v329_v61 = vld [vmem:[%s3226_s13 + $0x170] sm:$0xff]  ;;  %v330_v62 = vld [vmem:[%s3226_s13 + $0x178] sm:$0xff]  ;;  %v357_v63 = vpack.c.bf16 %v304_v59, %v303_v58  ;;  %v331_v0 = vld [vmem:[%s3226_s13 + $0x180] sm:$0xff] }
  0x20   : > { %2651 = vmatprep.mubr.msk.bf16.mxu0 %vm402_vm0, %v351_v17  ;;  %2710 = vmatpush3.bf16.msra.mxu1 %v2882_v29  ;;  %v332_v1 = vld [vmem:[%s3226_s13 + $0x188] sm:$0xff]  ;;  %v2887_v2 = vld [vmem:[%s4259_s3 + $0x30] sm:$0xff]   ;;  %v370_v3 = vpack.c.bf16 %v330_v62, %v329_v61  ;;  %v306_v6 = vld [vmem:[%s3226_s13 + $0xb8] sm:$0xff] }
  0x21   : > { %2711 = vmatprep.subr.bf16.mxu1 %v2883_v38  ;;  %v371_v4 = vpack.c.bf16 %v332_v1, %v331_v0  ;;  %v305_v5 = vld [vmem:[%s3226_s13 + $0xb0] sm:$0xff]  ;;  %v307_v7 = vld [vmem:[%s3226_s13 + $0xc0] sm:$0xff]  ;;  %v308_v8 = vld [vmem:[%s3226_s13 + $0xc8] sm:$0xff] }
  0x22   : > { %v358_v9 = vpack.c.bf16 %v306_v6, %v305_v5  ;;  %v333_v10 = vld [vmem:[%s3226_s13 + $0x190] sm:$0xff]  ;;  %v334_v11 = vld [vmem:[%s3226_s13 + $0x198] sm:$0xff]  ;;  %v359_v12 = vpack.c.bf16 %v308_v8, %v307_v7  ;;  %v335_v13 = vld [vmem:[%s3226_s13 + $0x1a0] sm:$0xff] }
  0x23   : > { %2680 = vmatmul.mubr.msk.bf16.gmra.mrb[4].mxu1 %vm402_vm0, %v366_v39  ;;  %v336_v14 = vld [vmem:[%s3226_s13 + $0x1a8] sm:$0xff]  ;;  %v372_v15 = vpack.c.bf16 %v334_v11, %v333_v10  ;;  %v309_v17 = vld [vmem:[%s3226_s13 + $0xd0] sm:$0xff]  ;;  %v310_v18 = vld [vmem:[%s3226_s13 + $0xd8] sm:$0xff] }
  0x24   : > { %2683 = vmatprep.mubr.msk.bf16.mxu1 %vm402_vm0, %v367_v44  ;;  %2712 = vmatpush3.bf16.msra.mxu1 %v2883_v38  ;;  %v373_v16 = vpack.c.bf16 %v336_v14, %v335_v13  ;;  %v311_v19 = vld [vmem:[%s3226_s13 + $0xe0] sm:$0xff]  ;;  %v312_v20 = vld [vmem:[%s3226_s13 + $0xe8] sm:$0xff]  ;;  %v360_v21 = vpack.c.bf16 %v310_v18, %v309_v17  ;;  %v337_v22 = vld [vmem:[%s3226_s13 + $0x1b0] sm:$0xff] }
  0x25   : > { %2713 = vmatprep.subr.bf16.mxu1 %v2884_v40  ;;  %v338_v23 = vld [vmem:[%s3226_s13 + $0x1b8] sm:$0xff]  ;;  %v361_v24 = vpack.c.bf16 %v312_v20, %v311_v19  ;;  %v339_v25 = vld [vmem:[%s3226_s13 + $0x1c0] sm:$0xff]  ;;  %v340_v26 = vld [vmem:[%s3226_s13 + $0x1c8] sm:$0xff] }
  0x26   : > { %v374_v27 = vpack.c.bf16 %v338_v23, %v337_v22  ;;  %v375_v28 = vpack.c.bf16 %v340_v26, %v339_v25  ;;  %v313_v29 = vld [vmem:[%s3226_s13 + $0xf0] sm:$0xff]  ;;  %v314_v30 = vld [vmem:[%s3226_s13 + $0xf8] sm:$0xff]  ;;  %v343_v34 = vld [vmem:[%s3226_s13 + $0x1e0] sm:$0xff] }
  0x27   : > { %2652 = vmatmul.mubr.msk.bf16.gmra.mrb[8].mxu0 %vm402_vm0, %v352_v32  ;;  %v362_v31 = vpack.c.bf16 %v314_v30, %v313_v29  ;;  %v341_v32 = vld [vmem:[%s3226_s13 + $0x1d0] sm:$0xff]  ;;  %v342_v33 = vld [vmem:[%s3226_s13 + $0x1d8] sm:$0xff]  ;;  %v3348_v42 = vld [vmem:[%s4258_s2] ss:$0 sm:$0xff] }
  0x28   : > { %2655 = vmatprep.mubr.msk.bf16.mxu0 %vm402_vm0, %v353_v35  ;;  %2714 = vmatpush3.bf16.msra.mxu1 %v2884_v40  ;;  %v344_v35 = vld [vmem:[%s3226_s13 + $0x1e8] sm:$0xff]  ;;  %v376_v36 = vpack.c.bf16 %v342_v33, %v341_v32  ;;  %v345_v38 = vld [vmem:[%s3226_s13 + $0x1f0] sm:$0xff]  ;;  %v346_v39 = vld [vmem:[%s3226_s13 + $0x1f8] sm:$0xff] }
  0x29   : > { %2715 = vmatprep.subr.bf16.mxu1 %v2885_v50  ;;  %v377_v37 = vpack.c.bf16 %v344_v35, %v343_v34  ;;  %v378_v40 = vpack.c.bf16 %v346_v39, %v345_v38  ;;  %v2888_v41 = vld [vmem:[%s4259_s3 + $0x38] sm:$0xff]   ;;  %v2891_v58 = vld [vmem:[%s4261_s5 + $0x10] sm:$0xff]   ;;  %v2893_v20 = vld [vmem:[%s4261_s5 + $0x20] sm:$0xff]  }
  0x2a   : > { %v2894_v34 = vld [vmem:[%s4261_s5 + $0x28] sm:$0xff]  }
  0x2b   : > { %2684 = vmatmul.mubr.msk.bf16.gmra.mrb[8].mxu1 %vm402_vm0, %v368_v54 }
  0x2c   : > { %2687 = vmatprep.mubr.msk.bf16.mxu1 %vm402_vm0, %v369_v55  ;;  %2716 = vmatpush3.bf16.msra.mxu1 %v2885_v50  ;;  %v2889_v50 = vld [vmem:[%s4261_s5] sm:$0xff]  }
  0x2d   : > { %2717 = vmatprep.subr.bf16.mxu1 %v2886_v57  ;;  %2787 = vmatprep.subr.bf16.mxu0 %v2889_v50 }
  0x2e   : > { %2788 = vmatpush3.bf16.msra.mxu0 %v2889_v50 }
  0x2f   : > { %2656 = vmatmul.mubr.msk.bf16.gmra.mrb[12].mxu0 %vm402_vm0, %v354_v51  ;;  %v2890_v51 = vld [vmem:[%s4261_s5 + $0x8] sm:$0xff]  }
  0x30   : > { %2659 = vmatprep.mubr.msk.bf16.mxu0 %vm402_vm0, %v355_v52  ;;  %2718 = vmatpush3.bf16.msra.mxu1 %v2886_v57 }
  0x31   : > { %2719 = vmatprep.subr.bf16.mxu1 %v2887_v2  ;;  %2789 = vmatprep.subr.bf16.mxu0 %v2890_v51 }
  0x32   : > { %2790 = vmatpush3.bf16.msra.mxu0 %v2890_v51  ;;  %v2895_v51 = vld [vmem:[%s4261_s5 + $0x30] sm:$0xff]  }
  0x33   : > { %2688 = vmatmul.mubr.msk.bf16.gmra.mrb[12].mxu1 %vm402_vm0, %v370_v3  ;;  %2791 = vmatprep.subr.bf16.mxu0 %v2891_v58 }
  0x34   : > { %2691 = vmatprep.mubr.msk.bf16.mxu1 %vm402_vm0, %v371_v4  ;;  %2720 = vmatpush3.bf16.msra.mxu1 %v2887_v2  ;;  %v2892_v4 = vld [vmem:[%s4261_s5 + $0x18] sm:$0xff]  }
  0x35   : > { %2721 = vmatprep.subr.bf16.mxu1 %v2888_v41 }
  0x36   : > { %2792 = vmatpush3.bf16.msra.mxu0 %v2891_v58 }
  0x37   : > { %2660 = vmatmul.mubr.msk.bf16.gmra.mrb[16].mxu0 %vm402_vm0, %v356_v60  ;;  %2793 = vmatprep.subr.bf16.mxu0 %v2892_v4 }
  0x38   : > { %2663 = vmatprep.mubr.msk.bf16.mxu0 %vm402_vm0, %v357_v63  ;;  %2722 = vmatpush3.bf16.msra.mxu1 %v2888_v41 }
  0x3a   : > { %2794 = vmatpush3.bf16.msra.mxu0 %v2892_v4 }
  0x3b   : > { %2692 = vmatmul.mubr.msk.bf16.gmra.mrb[16].mxu1 %vm402_vm0, %v372_v15  ;;  %2795 = vmatprep.subr.bf16.mxu0 %v2893_v20 }
  0x3c   : > { %2695 = vmatprep.mubr.msk.bf16.mxu1 %vm402_vm0, %v373_v16 }
  0x3e   : > { %2796 = vmatpush3.bf16.msra.mxu0 %v2893_v20 }
  0x3f   : > { %2664 = vmatmul.mubr.msk.bf16.gmra.mrb[20].mxu0 %vm402_vm0, %v358_v9  ;;  %2797 = vmatprep.subr.bf16.mxu0 %v2894_v34 }
  0x40   : > { %2667 = vmatprep.mubr.msk.bf16.mxu0 %vm402_vm0, %v359_v12 }
  0x42   : > { %2798 = vmatpush3.bf16.msra.mxu0 %v2894_v34 }
  0x43   : > { %2696 = vmatmul.mubr.msk.bf16.gmra.mrb[20].mxu1 %vm402_vm0, %v374_v27  ;;  %2799 = vmatprep.subr.bf16.mxu0 %v2895_v51 }
  0x44   : > { %2699 = vmatprep.mubr.msk.bf16.mxu1 %vm402_vm0, %v375_v28 }
  0x46   : > { %2800 = vmatpush3.bf16.msra.mxu0 %v2895_v51 }
  0x47   : > { %2668 = vmatmul.mubr.msk.bf16.gmra.mrb[24].mxu0 %vm402_vm0, %v360_v21 }
  0x48   : > { %2671 = vmatprep.mubr.msk.bf16.mxu0 %vm402_vm0, %v361_v24 }
  0x4b   : > { %2700 = vmatmul.mubr.msk.bf16.gmra.mrb[24].mxu1 %vm402_vm0, %v376_v36 }
  0x4c   : > { %2703 = vmatprep.mubr.msk.bf16.mxu1 %vm402_vm0, %v377_v37 }
  0x4f   : > { %2672 = vmatmul.mubr.msk.bf16.gmra.mrb[28].mxu0 %vm402_vm0, %v362_v31 }
  0x53   : > { %2704 = vmatmul.mubr.msk.bf16.gmra.mrb[28].mxu1 %vm402_vm0, %v378_v40 }
  0xea   : > { %v2645_v43 = vpop.f32.mrb[0].mxu0 }
  0xeb   : > { %v542_v44 = vadd.f32 %v2645_v43, %v3348_v42  ;;  %v533_v45 = vpop.f32.mrb[1].mxu0 }
  0xec   : > { %v534_v46 = vadd.f32 %v3348_v42, %v533_v45  ;;  %v2646_v47 = vpop.f32.mrb[2].mxu0 }
  0xed   : > { %v545_v48 = vadd.f32 %v2646_v47, %v3348_v42  ;;  %v536_v49 = vpop.f32.mrb[3].mxu0  ;;  %v790_v53 = vmax.f32 %v542_v44, 0.0 }
  0xee   : > { %v537_v52 = vadd.f32 %v3348_v42, %v536_v49  ;;  %v788_v55 = vmax.f32 %v534_v46, 0.0  ;;  %v2677_v3 = vpop.f32.mrb[0].mxu1 }
  0xef   : > { %v791_v54 = vmax.f32 %v545_v48, 0.0  ;;  %v670_v6 = vadd.f32 %v2677_v3, %v3348_v42  ;;  %v661_v7 = vpop.f32.mrb[1].mxu1 }
  0xf0   : > { %v789_v56 = vmax.f32 %v537_v52, 0.0  ;;  %v662_v10 = vadd.f32 %v3348_v42, %v661_v7  ;;  %v2678_v11 = vpop.f32.mrb[2].mxu1 }
  0xf1   : > { %v853_v57 = vpack.c.bf16 %v791_v54, %v790_v53  ;;  %v822_v14 = vmax.f32 %v670_v6, 0.0  ;;  %v673_v15 = vadd.f32 %v2678_v11, %v3348_v42  ;;  %v664_v16 = vpop.f32.mrb[3].mxu1 }
  0xf2   : > { %v852_v59 = vpack.c.bf16 %v789_v56, %v788_v55  ;;  %v2649_v60 = vpop.f32.mrb[4].mxu0  ;;  %v820_v18 = vmax.f32 %v662_v10, 0.0  ;;  %v665_v19 = vadd.f32 %v3348_v42, %v664_v16 }
  0xf3   : > { %v558_v61 = vadd.f32 %v2649_v60, %v3348_v42  ;;  %v549_v62 = vpop.f32.mrb[5].mxu0  ;;  %v823_v23 = vmax.f32 %v673_v15, 0.0 }
  0xf4   : > { %v550_v63 = vadd.f32 %v3348_v42, %v549_v62  ;;  %v2650_v0 = vpop.f32.mrb[6].mxu0  ;;  %2723 = vmatprep.mubr.bf16.mxu1 %v852_v59  ;;  %v821_v26 = vmax.f32 %v665_v19, 0.0 }
  0xf5   : > { %v561_v1 = vadd.f32 %v2650_v0, %v3348_v42  ;;  %v552_v2 = vpop.f32.mrb[7].mxu0  ;;  %2724 = vmatmul.mubr.bf16.vlgmr.msra.gmra.mrb[32].mxu1 %v853_v57  ;;  %v794_v8 = vmax.f32 %v558_v61, 0.0  ;;  %v3379_v29 = vpack.c.bf16 %v823_v23, %v822_v14 }
  0xf6   : > { %v553_v5 = vadd.f32 %v3348_v42, %v552_v2  ;;  %v792_v12 = vmax.f32 %v550_v63, 0.0  ;;  %v3382_v32 = vpack.c.bf16 %v821_v26, %v820_v18  ;;  %v2681_v33 = vpop.f32.mrb[4].mxu1 }
  0xf7   : > { %v795_v9 = vmax.f32 %v561_v1, 0.0  ;;  %v686_v36 = vadd.f32 %v2681_v33, %v3348_v42  ;;  %v677_v37 = vpop.f32.mrb[5].mxu1 }
  0xf8   : > { %v793_v13 = vmax.f32 %v553_v5, 0.0  ;;  %v678_v40 = vadd.f32 %v3348_v42, %v677_v37  ;;  %v2682_v41 = vpop.f32.mrb[6].mxu1 }
  0xf9   : > { %v855_v17 = vpack.c.bf16 %v795_v9, %v794_v8  ;;  %v826_v45 = vmax.f32 %v686_v36, 0.0  ;;  %v689_v46 = vadd.f32 %v2682_v41, %v3348_v42  ;;  %v680_v47 = vpop.f32.mrb[7].mxu1 }
  0xfa   : > { %v854_v21 = vpack.c.bf16 %v793_v13, %v792_v12  ;;  %v2653_v22 = vpop.f32.mrb[8].mxu0  ;;  %v824_v49 = vmax.f32 %v678_v40, 0.0  ;;  %v681_v50 = vadd.f32 %v3348_v42, %v680_v47 }
  0xfb   : > { %v574_v24 = vadd.f32 %v2653_v22, %v3348_v42  ;;  %v565_v25 = vpop.f32.mrb[9].mxu0  ;;  %v827_v54 = vmax.f32 %v689_v46, 0.0 }
  0xfc   : > { %v566_v27 = vadd.f32 %v3348_v42, %v565_v25  ;;  %v2654_v28 = vpop.f32.mrb[10].mxu0  ;;  %2727 = vmatprep.mubr.bf16.mxu1 %v854_v21  ;;  %v825_v57 = vmax.f32 %v681_v50, 0.0 }
  0xfd   : > { %v577_v30 = vadd.f32 %v2654_v28, %v3348_v42  ;;  %v568_v31 = vpop.f32.mrb[11].mxu0  ;;  %2728 = vmatmul.mubr.bf16.gmra.mrb[36].mxu1 %v855_v17  ;;  %v798_v38 = vmax.f32 %v574_v24, 0.0  ;;  %v3397_v60 = vpack.c.bf16 %v827_v54, %v826_v45 }
  0xfe   : > { %v569_v35 = vadd.f32 %v3348_v42, %v568_v31  ;;  %v796_v43 = vmax.f32 %v566_v27, 0.0  ;;  %v3400_v63 = vpack.c.bf16 %v825_v57, %v824_v49  ;;  %v2685_v0 = vpop.f32.mrb[8].mxu1 }
  0xff   : > { %v799_v39 = vmax.f32 %v577_v30, 0.0  ;;  %v702_v2 = vadd.f32 %v2685_v0, %v3348_v42  ;;  %v693_v3 = vpop.f32.mrb[9].mxu1 }
 0x100   : > { %v797_v44 = vmax.f32 %v569_v35, 0.0  ;;  %v694_v6 = vadd.f32 %v3348_v42, %v693_v3  ;;  %v2686_v7 = vpop.f32.mrb[10].mxu1 }
 0x101   : > { %v857_v48 = vpack.c.bf16 %v799_v39, %v798_v38  ;;  %v830_v10 = vmax.f32 %v702_v2, 0.0  ;;  %v705_v11 = vadd.f32 %v2686_v7, %v3348_v42  ;;  %v696_v12 = vpop.f32.mrb[11].mxu1 }
 0x102   : > { %v856_v52 = vpack.c.bf16 %v797_v44, %v796_v43  ;;  %v2657_v53 = vpop.f32.mrb[12].mxu0  ;;  %v828_v14 = vmax.f32 %v694_v6, 0.0  ;;  %v697_v15 = vadd.f32 %v3348_v42, %v696_v12 }
 0x103   : > { %v590_v55 = vadd.f32 %v2657_v53, %v3348_v42  ;;  %v581_v56 = vpop.f32.mrb[13].mxu0  ;;  %v831_v18 = vmax.f32 %v705_v11, 0.0 }
 0x104   : > { %v582_v58 = vadd.f32 %v3348_v42, %v581_v56  ;;  %v2658_v59 = vpop.f32.mrb[14].mxu0  ;;  %2731 = vmatprep.mubr.bf16.mxu1 %v856_v52  ;;  %v829_v21 = vmax.f32 %v697_v15, 0.0 }
 0x105   : > { %v593_v61 = vadd.f32 %v2658_v59, %v3348_v42  ;;  %v584_v62 = vpop.f32.mrb[15].mxu0  ;;  %2732 = vmatmul.mubr.bf16.gmra.mrb[40].mxu1 %v857_v48  ;;  %v802_v4 = vmax.f32 %v590_v55, 0.0  ;;  %v3409_v24 = vpack.c.bf16 %v831_v18, %v830_v10 }
 0x106   : > { %v585_v1 = vadd.f32 %v3348_v42, %v584_v62  ;;  %v800_v8 = vmax.f32 %v582_v58, 0.0  ;;  %v3412_v27 = vpack.c.bf16 %v829_v21, %v828_v14  ;;  %v2689_v28 = vpop.f32.mrb[12].mxu1 }
 0x107   : > { %v803_v5 = vmax.f32 %v593_v61, 0.0  ;;  %v718_v31 = vadd.f32 %v2689_v28, %v3348_v42  ;;  %v709_v33 = vpop.f32.mrb[13].mxu1 }
 0x108   : > { %v801_v9 = vmax.f32 %v585_v1, 0.0  ;;  %v710_v36 = vadd.f32 %v3348_v42, %v709_v33  ;;  %v2690_v37 = vpop.f32.mrb[14].mxu1 }
 0x109   : > { %v859_v13 = vpack.c.bf16 %v803_v5, %v802_v4  ;;  %v834_v40 = vmax.f32 %v718_v31, 0.0  ;;  %v721_v41 = vadd.f32 %v2690_v37, %v3348_v42  ;;  %v712_v43 = vpop.f32.mrb[15].mxu1 }
 0x10a   : > { %v858_v16 = vpack.c.bf16 %v801_v9, %v800_v8  ;;  %v2661_v17 = vpop.f32.mrb[16].mxu0  ;;  %v832_v45 = vmax.f32 %v710_v36, 0.0  ;;  %v713_v46 = vadd.f32 %v3348_v42, %v712_v43 }
 0x10b   : > { %v606_v19 = vadd.f32 %v2661_v17, %v3348_v42  ;;  %v597_v20 = vpop.f32.mrb[17].mxu0  ;;  %v835_v49 = vmax.f32 %v721_v41, 0.0 }
 0x10c   : > { %v598_v22 = vadd.f32 %v3348_v42, %v597_v20  ;;  %v2662_v23 = vpop.f32.mrb[18].mxu0  ;;  %2735 = vmatprep.mubr.bf16.mxu1 %v858_v16  ;;  %v833_v52 = vmax.f32 %v713_v46, 0.0 }
 0x10d   : > { %v609_v25 = vadd.f32 %v2662_v23, %v3348_v42  ;;  %v600_v26 = vpop.f32.mrb[19].mxu0  ;;  %2736 = vmatmul.mubr.bf16.gmra.mrb[44].mxu1 %v859_v13  ;;  %v806_v34 = vmax.f32 %v606_v19, 0.0  ;;  %v3421_v55 = vpack.c.bf16 %v835_v49, %v834_v40 }
 0x10e   : > { %v601_v30 = vadd.f32 %v3348_v42, %v600_v26  ;;  %v804_v38 = vmax.f32 %v598_v22, 0.0  ;;  %v3424_v58 = vpack.c.bf16 %v833_v52, %v832_v45  ;;  %v2693_v59 = vpop.f32.mrb[16].mxu1 }
 0x10f   : > { %v807_v35 = vmax.f32 %v609_v25, 0.0  ;;  %v734_v62 = vadd.f32 %v2693_v59, %v3348_v42  ;;  %v725_v0 = vpop.f32.mrb[17].mxu1 }
 0x110   : > { %v805_v39 = vmax.f32 %v601_v30, 0.0  ;;  %v726_v3 = vadd.f32 %v3348_v42, %v725_v0  ;;  %v2694_v4 = vpop.f32.mrb[18].mxu1 }
 0x111   : > { %v861_v44 = vpack.c.bf16 %v807_v35, %v806_v34  ;;  %v838_v7 = vmax.f32 %v734_v62, 0.0  ;;  %v737_v8 = vadd.f32 %v2694_v4, %v3348_v42  ;;  %v728_v9 = vpop.f32.mrb[19].mxu1 }
 0x112   : > { %v860_v47 = vpack.c.bf16 %v805_v39, %v804_v38  ;;  %v2665_v48 = vpop.f32.mrb[20].mxu0  ;;  %v836_v11 = vmax.f32 %v726_v3, 0.0  ;;  %v729_v12 = vadd.f32 %v3348_v42, %v728_v9 }
 0x113   : > { %v622_v50 = vadd.f32 %v2665_v48, %v3348_v42  ;;  %v613_v51 = vpop.f32.mrb[21].mxu0  ;;  %v839_v15 = vmax.f32 %v737_v8, 0.0 }
 0x114   : > { %v614_v53 = vadd.f32 %v3348_v42, %v613_v51  ;;  %v2666_v54 = vpop.f32.mrb[22].mxu0  ;;  %2739 = vmatprep.mubr.bf16.mxu1 %v860_v47  ;;  %v837_v18 = vmax.f32 %v729_v12, 0.0 }
 0x115   : > { %v625_v56 = vadd.f32 %v2666_v54, %v3348_v42  ;;  %v616_v57 = vpop.f32.mrb[23].mxu0  ;;  %2740 = vmatmul.mubr.bf16.gmra.mrb[48].mxu1 %v861_v44  ;;  %v810_v1 = vmax.f32 %v622_v50, 0.0  ;;  %v3433_v21 = vpack.c.bf16 %v839_v15, %v838_v7 }
 0x116   : > { %v617_v61 = vadd.f32 %v3348_v42, %v616_v57  ;;  %v808_v5 = vmax.f32 %v614_v53, 0.0  ;;  %v3436_v25 = vpack.c.bf16 %v837_v18, %v836_v11  ;;  %v2697_v26 = vpop.f32.mrb[20].mxu1 }
 0x117   : > { %v811_v2 = vmax.f32 %v625_v56, 0.0  ;;  %v750_v30 = vadd.f32 %v2697_v26, %v3348_v42  ;;  %v741_v31 = vpop.f32.mrb[21].mxu1 }
 0x118   : > { %v809_v6 = vmax.f32 %v617_v61, 0.0  ;;  %v742_v35 = vadd.f32 %v3348_v42, %v741_v31  ;;  %v2698_v36 = vpop.f32.mrb[22].mxu1 }
 0x119   : > { %v863_v10 = vpack.c.bf16 %v811_v2, %v810_v1  ;;  %v842_v39 = vmax.f32 %v750_v30, 0.0  ;;  %v753_v40 = vadd.f32 %v2698_v36, %v3348_v42  ;;  %v744_v41 = vpop.f32.mrb[23].mxu1 }
 0x11a   : > { %v862_v13 = vpack.c.bf16 %v809_v6, %v808_v5  ;;  %v2669_v14 = vpop.f32.mrb[24].mxu0  ;;  %v840_v44 = vmax.f32 %v742_v35, 0.0  ;;  %v745_v45 = vadd.f32 %v3348_v42, %v744_v41 }
 0x11b   : > { %v638_v16 = vadd.f32 %v2669_v14, %v3348_v42  ;;  %v629_v17 = vpop.f32.mrb[25].mxu0  ;;  %v843_v48 = vmax.f32 %v753_v40, 0.0 }
 0x11c   : > { %v630_v19 = vadd.f32 %v3348_v42, %v629_v17  ;;  %v2670_v20 = vpop.f32.mrb[26].mxu0  ;;  %2743 = vmatprep.mubr.bf16.mxu1 %v862_v13  ;;  %v841_v51 = vmax.f32 %v745_v45, 0.0 }
 0x11d   : > { %v641_v22 = vadd.f32 %v2670_v20, %v3348_v42  ;;  %v632_v23 = vpop.f32.mrb[27].mxu0  ;;  %2744 = vmatmul.mubr.bf16.gmra.mrb[52].mxu1 %v863_v10  ;;  %v814_v33 = vmax.f32 %v638_v16, 0.0  ;;  %v879_v54 = vpack.c.bf16 %v843_v48, %v842_v39 }
 0x11e   : > { %v633_v28 = vadd.f32 %v3348_v42, %v632_v23  ;;  %v812_v37 = vmax.f32 %v630_v19, 0.0  ;;  %v878_v59 = vpack.c.bf16 %v841_v51, %v840_v44  ;;  %v2701_v61 = vpop.f32.mrb[24].mxu1 }
 0x11f   : > { %v815_v34 = vmax.f32 %v641_v22, 0.0  ;;  %v766_v0 = vadd.f32 %v2701_v61, %v3348_v42  ;;  %v757_v1 = vpop.f32.mrb[25].mxu1 }
 0x120   : > { %v813_v38 = vmax.f32 %v633_v28, 0.0  ;;  %v758_v4 = vadd.f32 %v3348_v42, %v757_v1  ;;  %v2702_v5 = vpop.f32.mrb[26].mxu1 }
 0x121   : > { %v865_v43 = vpack.c.bf16 %v815_v34, %v814_v33  ;;  %v846_v8 = vmax.f32 %v766_v0, 0.0  ;;  %v769_v9 = vadd.f32 %v2702_v5, %v3348_v42  ;;  %v760_v10 = vpop.f32.mrb[27].mxu1 }
 0x122   : > { %v864_v46 = vpack.c.bf16 %v813_v38, %v812_v37  ;;  %v2673_v47 = vpop.f32.mrb[28].mxu0  ;;  %v844_v12 = vmax.f32 %v758_v4, 0.0  ;;  %v761_v13 = vadd.f32 %v3348_v42, %v760_v10 }
 0x123   : > { %v654_v49 = vadd.f32 %v2673_v47, %v3348_v42  ;;  %v645_v50 = vpop.f32.mrb[29].mxu0  ;;  %v847_v15 = vmax.f32 %v769_v9, 0.0 }
 0x124   : > { %v646_v52 = vadd.f32 %v3348_v42, %v645_v50  ;;  %v2674_v53 = vpop.f32.mrb[30].mxu0  ;;  %2747 = vmatprep.mubr.bf16.mxu1 %v864_v46  ;;  %v845_v16 = vmax.f32 %v761_v13, 0.0 }
 0x125   : > { %v657_v56 = vadd.f32 %v2674_v53, %v3348_v42  ;;  %v648_v57 = vpop.f32.mrb[31].mxu0  ;;  %2748 = vmatmul.mubr.bf16.gmra.mrb[56].mxu1 %v865_v43  ;;  %v818_v2 = vmax.f32 %v654_v49, 0.0  ;;  %v881_v17 = vpack.c.bf16 %v847_v15, %v846_v8 }
 0x126   : > { %v649_v62 = vadd.f32 %v3348_v42, %v648_v57  ;;  %v816_v6 = vmax.f32 %v646_v52, 0.0  ;;  %v880_v18 = vpack.c.bf16 %v845_v16, %v844_v12  ;;  %v2705_v19 = vpop.f32.mrb[28].mxu1 }
 0x127   : > { %v819_v3 = vmax.f32 %v657_v56, 0.0  ;;  %v782_v20 = vadd.f32 %v2705_v19, %v3348_v42  ;;  %v773_v22 = vpop.f32.mrb[29].mxu1 }
 0x128   : > { %v817_v7 = vmax.f32 %v649_v62, 0.0  ;;  %v774_v23 = vadd.f32 %v3348_v42, %v773_v22  ;;  %v2706_v26 = vpop.f32.mrb[30].mxu1 }
 0x129   : > { %v867_v11 = vpack.c.bf16 %v819_v3, %v818_v2  ;;  %v850_v28 = vmax.f32 %v782_v20, 0.0  ;;  %v785_v30 = vadd.f32 %v2706_v26, %v3348_v42  ;;  %v776_v31 = vpop.f32.mrb[31].mxu1 }
 0x12a   : > { %v866_v14 = vpack.c.bf16 %v817_v7, %v816_v6  ;;  %v848_v33 = vmax.f32 %v774_v23, 0.0  ;;  %v777_v34 = vadd.f32 %v3348_v42, %v776_v31  ;;  %v2896_v42 = vld [vmem:[%s4261_s5 + $0x38] sm:$0xff]  }
 0x12b   : > { %v851_v35 = vmax.f32 %v785_v30, 0.0  ;;  %2801 = vmatprep.subr.bf16.mxu0 %v2896_v42 }
 0x12c   : > { %2751 = vmatprep.mubr.bf16.mxu1 %v866_v14  ;;  %v849_v36 = vmax.f32 %v777_v34, 0.0  ;;  %2802 = vmatpush3.bf16.msra.mxu0 %v2896_v42 }
 0x12d   : > { %2752 = vmatmul.mubr.bf16.gmra.mrb[60].mxu1 %v867_v11  ;;  %v883_v37 = vpack.c.bf16 %v851_v35, %v850_v28 }
 0x12e   : > { %2755 = vmatprep.mubr.bf16.mxu1 %v3382_v32  ;;  %v882_v38 = vpack.c.bf16 %v849_v36, %v848_v33 }
 0x135   : > { %2756 = vmatmul.mubr.bf16.gmra.mrb[64].mxu1 %v3379_v29  ;;  %v3471_v29 = vld [vmem:[%s4260_s4] ss:$0 sm:$0xff] }
 0x136   : > { %2759 = vmatprep.mubr.bf16.mxu1 %v3400_v63 }
 0x13d   : > { %2760 = vmatmul.mubr.bf16.gmra.mrb[68].mxu1 %v3397_v60 }
 0x13e   : > { %2763 = vmatprep.mubr.bf16.mxu1 %v3412_v27 }
 0x145   : > { %2764 = vmatmul.mubr.bf16.gmra.mrb[72].mxu1 %v3409_v24 }
 0x146   : > { %2767 = vmatprep.mubr.bf16.mxu1 %v3424_v58 }
 0x14d   : > { %2768 = vmatmul.mubr.bf16.gmra.mrb[76].mxu1 %v3421_v55 }
 0x14e   : > { %2771 = vmatprep.mubr.bf16.mxu1 %v3436_v25 }
 0x155   : > { %2772 = vmatmul.mubr.bf16.gmra.mrb[80].mxu1 %v3433_v21 }
 0x156   : > { %2775 = vmatprep.mubr.bf16.mxu1 %v878_v59 }
 0x15d   : > { %2776 = vmatmul.mubr.bf16.gmra.mrb[84].mxu1 %v879_v54 }
 0x15e   : > { %2779 = vmatprep.mubr.bf16.mxu1 %v880_v18 }
 0x165   : > { %2780 = vmatmul.mubr.bf16.gmra.mrb[88].mxu1 %v881_v17 }
 0x166   : > { %2783 = vmatprep.mubr.bf16.mxu1 %v882_v38 }
 0x16d   : > { %2784 = vmatmul.mubr.bf16.gmra.mrb[92].mxu1 %v883_v37 }
 0x1c8   : > { %v2725_v32 = vpop.f32.mrb[32].mxu1 }
 0x1c9   : > { %v998_v60 = vadd.f32 %v2725_v32, %v3471_v29  ;;  %v989_v63 = vpop.f32.mrb[33].mxu1 }
 0x1ca   : > { %v990_v24 = vadd.f32 %v3471_v29, %v989_v63  ;;  %v2726_v27 = vpop.f32.mrb[34].mxu1 }
 0x1cb   : > { %v1001_v55 = vadd.f32 %v2726_v27, %v3471_v29  ;;  %v992_v58 = vpop.f32.mrb[35].mxu1  ;;  %v1246_v25 = vmax.f32 %v998_v60, 0.0 }
 0x1cc   : > { %v993_v21 = vadd.f32 %v3471_v29, %v992_v58  ;;  %v1244_v40 = vmax.f32 %v990_v24, 0.0 }
 0x1cd   : > { %v1247_v39 = vmax.f32 %v1001_v55, 0.0 }
 0x1ce   : > { %v1245_v41 = vmax.f32 %v993_v21, 0.0 }
 0x1cf   : > { %v1309_v43 = vpack.c.bf16 %v1247_v39, %v1246_v25 }
 0x1d0   : > { %v1308_v44 = vpack.c.bf16 %v1245_v41, %v1244_v40  ;;  %v2729_v45 = vpop.f32.mrb[36].mxu1 }
 0x1d1   : > { %v1014_v46 = vadd.f32 %v2729_v45, %v3471_v29  ;;  %v1005_v47 = vpop.f32.mrb[37].mxu1 }
 0x1d2   : > { %v1006_v48 = vadd.f32 %v3471_v29, %v1005_v47  ;;  %v2730_v49 = vpop.f32.mrb[38].mxu1  ;;  %2803 = vmatprep.mubr.bf16.mxu0 %v1308_v44 }
 0x1d3   : > { %v1017_v50 = vadd.f32 %v2730_v49, %v3471_v29  ;;  %v1008_v51 = vpop.f32.mrb[39].mxu1  ;;  %2804 = vmatmul.mubr.bf16.vlgmr.msra.gmra.mrb[32].mxu0 %v1309_v43  ;;  %v1250_v53 = vmax.f32 %v1014_v46, 0.0 }
 0x1d4   : > { %v1009_v52 = vadd.f32 %v3471_v29, %v1008_v51  ;;  %v1248_v56 = vmax.f32 %v1006_v48, 0.0 }
 0x1d5   : > { %v1251_v54 = vmax.f32 %v1017_v50, 0.0 }
 0x1d6   : > { %v1249_v57 = vmax.f32 %v1009_v52, 0.0 }
 0x1d7   : > { %v1311_v59 = vpack.c.bf16 %v1251_v54, %v1250_v53 }
 0x1d8   : > { %v1310_v61 = vpack.c.bf16 %v1249_v57, %v1248_v56  ;;  %v2733_v62 = vpop.f32.mrb[40].mxu1 }
 0x1d9   : > { %v1030_v0 = vadd.f32 %v2733_v62, %v3471_v29  ;;  %v1021_v1 = vpop.f32.mrb[41].mxu1 }
 0x1da   : > { %v1022_v2 = vadd.f32 %v3471_v29, %v1021_v1  ;;  %v2734_v3 = vpop.f32.mrb[42].mxu1  ;;  %2807 = vmatprep.mubr.bf16.mxu0 %v1310_v61 }
 0x1db   : > { %v1033_v4 = vadd.f32 %v2734_v3, %v3471_v29  ;;  %v1024_v5 = vpop.f32.mrb[43].mxu1  ;;  %2808 = vmatmul.mubr.bf16.gmra.mrb[36].mxu0 %v1311_v59  ;;  %v1254_v7 = vmax.f32 %v1030_v0, 0.0 }
 0x1dc   : > { %v1025_v6 = vadd.f32 %v3471_v29, %v1024_v5  ;;  %v1252_v9 = vmax.f32 %v1022_v2, 0.0 }
 0x1dd   : > { %v1255_v8 = vmax.f32 %v1033_v4, 0.0 }
 0x1de   : > { %v1253_v10 = vmax.f32 %v1025_v6, 0.0 }
 0x1df   : > { %v1313_v11 = vpack.c.bf16 %v1255_v8, %v1254_v7 }
 0x1e0   : > { %v1312_v12 = vpack.c.bf16 %v1253_v10, %v1252_v9  ;;  %v2737_v13 = vpop.f32.mrb[44].mxu1 }
 0x1e1   : > { %v1046_v14 = vadd.f32 %v2737_v13, %v3471_v29  ;;  %v1037_v15 = vpop.f32.mrb[45].mxu1 }
 0x1e2   : > { %v1038_v16 = vadd.f32 %v3471_v29, %v1037_v15  ;;  %v2738_v17 = vpop.f32.mrb[46].mxu1  ;;  %2811 = vmatprep.mubr.bf16.mxu0 %v1312_v12 }
 0x1e3   : > { %v1049_v18 = vadd.f32 %v2738_v17, %v3471_v29  ;;  %v1040_v19 = vpop.f32.mrb[47].mxu1  ;;  %2812 = vmatmul.mubr.bf16.gmra.mrb[40].mxu0 %v1313_v11  ;;  %v1258_v22 = vmax.f32 %v1046_v14, 0.0 }
 0x1e4   : > { %v1041_v20 = vadd.f32 %v3471_v29, %v1040_v19  ;;  %v1256_v26 = vmax.f32 %v1038_v16, 0.0 }
 0x1e5   : > { %v1259_v23 = vmax.f32 %v1049_v18, 0.0 }
 0x1e6   : > { %v1257_v28 = vmax.f32 %v1041_v20, 0.0 }
 0x1e7   : > { %v1315_v30 = vpack.c.bf16 %v1259_v23, %v1258_v22 }
 0x1e8   : > { %v1314_v31 = vpack.c.bf16 %v1257_v28, %v1256_v26  ;;  %v2741_v33 = vpop.f32.mrb[48].mxu1 }
 0x1e9   : > { %v1062_v34 = vadd.f32 %v2741_v33, %v3471_v29  ;;  %v1053_v35 = vpop.f32.mrb[49].mxu1 }
 0x1ea   : > { %v1054_v36 = vadd.f32 %v3471_v29, %v1053_v35  ;;  %v2742_v37 = vpop.f32.mrb[50].mxu1  ;;  %2815 = vmatprep.mubr.bf16.mxu0 %v1314_v31 }
 0x1eb   : > { %v1065_v38 = vadd.f32 %v2742_v37, %v3471_v29  ;;  %v1056_v42 = vpop.f32.mrb[51].mxu1  ;;  %2816 = vmatmul.mubr.bf16.gmra.mrb[44].mxu0 %v1315_v30  ;;  %v1262_v60 = vmax.f32 %v1062_v34, 0.0 }
 0x1ec   : > { %v1057_v32 = vadd.f32 %v3471_v29, %v1056_v42  ;;  %v1260_v24 = vmax.f32 %v1054_v36, 0.0 }
 0x1ed   : > { %v1263_v63 = vmax.f32 %v1065_v38, 0.0 }
 0x1ee   : > { %v1261_v27 = vmax.f32 %v1057_v32, 0.0 }
 0x1ef   : > { %v1317_v55 = vpack.c.bf16 %v1263_v63, %v1262_v60 }
 0x1f0   : > { %v1316_v58 = vpack.c.bf16 %v1261_v27, %v1260_v24  ;;  %v2745_v21 = vpop.f32.mrb[52].mxu1 }
 0x1f1   : > { %v1078_v25 = vadd.f32 %v2745_v21, %v3471_v29  ;;  %v1069_v39 = vpop.f32.mrb[53].mxu1 }
 0x1f2   : > { %v1070_v40 = vadd.f32 %v3471_v29, %v1069_v39  ;;  %v2746_v41 = vpop.f32.mrb[54].mxu1  ;;  %2819 = vmatprep.mubr.bf16.mxu0 %v1316_v58 }
 0x1f3   : > { %v1081_v43 = vadd.f32 %v2746_v41, %v3471_v29  ;;  %v1072_v44 = vpop.f32.mrb[55].mxu1  ;;  %2820 = vmatmul.mubr.bf16.gmra.mrb[48].mxu0 %v1317_v55  ;;  %v1266_v46 = vmax.f32 %v1078_v25, 0.0 }
 0x1f4   : > { %v1073_v45 = vadd.f32 %v3471_v29, %v1072_v44  ;;  %v1264_v48 = vmax.f32 %v1070_v40, 0.0 }
 0x1f5   : > { %v1267_v47 = vmax.f32 %v1081_v43, 0.0 }
 0x1f6   : > { %v1265_v49 = vmax.f32 %v1073_v45, 0.0 }
 0x1f7   : > { %v1319_v50 = vpack.c.bf16 %v1267_v47, %v1266_v46 }
 0x1f8   : > { %v1318_v51 = vpack.c.bf16 %v1265_v49, %v1264_v48  ;;  %v2749_v52 = vpop.f32.mrb[56].mxu1 }
 0x1f9   : > { %v1094_v53 = vadd.f32 %v2749_v52, %v3471_v29  ;;  %v1085_v54 = vpop.f32.mrb[57].mxu1 }
 0x1fa   : > { %v1086_v56 = vadd.f32 %v3471_v29, %v1085_v54  ;;  %v2750_v57 = vpop.f32.mrb[58].mxu1  ;;  %2823 = vmatprep.mubr.bf16.mxu0 %v1318_v51 }
 0x1fb   : > { %v1097_v59 = vadd.f32 %v2750_v57, %v3471_v29  ;;  %v1088_v61 = vpop.f32.mrb[59].mxu1  ;;  %2824 = vmatmul.mubr.bf16.gmra.mrb[52].mxu0 %v1319_v50  ;;  %v1270_v0 = vmax.f32 %v1094_v53, 0.0 }
 0x1fc   : > { %v1089_v62 = vadd.f32 %v3471_v29, %v1088_v61  ;;  %v1268_v2 = vmax.f32 %v1086_v56, 0.0 }
 0x1fd   : > { %v1271_v1 = vmax.f32 %v1097_v59, 0.0 }
 0x1fe   : > { %v1269_v3 = vmax.f32 %v1089_v62, 0.0 }
 0x1ff   : > { %v1321_v4 = vpack.c.bf16 %v1271_v1, %v1270_v0 }
 0x200   : > { %v1320_v5 = vpack.c.bf16 %v1269_v3, %v1268_v2  ;;  %v2753_v6 = vpop.f32.mrb[60].mxu1 }
 0x201   : > { %v1110_v7 = vadd.f32 %v2753_v6, %v3471_v29  ;;  %v1101_v8 = vpop.f32.mrb[61].mxu1 }
 0x202   : > { %v1102_v9 = vadd.f32 %v3471_v29, %v1101_v8  ;;  %v2754_v10 = vpop.f32.mrb[62].mxu1  ;;  %2827 = vmatprep.mubr.bf16.mxu0 %v1320_v5 }
 0x203   : > { %v1113_v11 = vadd.f32 %v2754_v10, %v3471_v29  ;;  %v1104_v12 = vpop.f32.mrb[63].mxu1  ;;  %2828 = vmatmul.mubr.bf16.gmra.mrb[56].mxu0 %v1321_v4  ;;  %v1274_v14 = vmax.f32 %v1110_v7, 0.0 }
 0x204   : > { %v1105_v13 = vadd.f32 %v3471_v29, %v1104_v12  ;;  %v1272_v16 = vmax.f32 %v1102_v9, 0.0 }
 0x205   : > { %v1275_v15 = vmax.f32 %v1113_v11, 0.0 }
 0x206   : > { %v1273_v17 = vmax.f32 %v1105_v13, 0.0 }
 0x207   : > { %v1323_v18 = vpack.c.bf16 %v1275_v15, %v1274_v14 }
 0x208   : > { %v1322_v19 = vpack.c.bf16 %v1273_v17, %v1272_v16  ;;  %v2757_v20 = vpop.f32.mrb[64].mxu1 }
 0x209   : > { %v1126_v22 = vadd.f32 %v2757_v20, %v3471_v29  ;;  %v1117_v23 = vpop.f32.mrb[65].mxu1 }
 0x20a   : > { %v1118_v26 = vadd.f32 %v3471_v29, %v1117_v23  ;;  %v2758_v28 = vpop.f32.mrb[66].mxu1  ;;  %2831 = vmatprep.mubr.bf16.mxu0 %v1322_v19 }
 0x20b   : > { %v1129_v30 = vadd.f32 %v2758_v28, %v3471_v29  ;;  %v1120_v31 = vpop.f32.mrb[67].mxu1  ;;  %2832 = vmatmul.mubr.bf16.gmra.mrb[60].mxu0 %v1323_v18  ;;  %v1278_v34 = vmax.f32 %v1126_v22, 0.0 }
 0x20c   : > { %v1121_v33 = vadd.f32 %v3471_v29, %v1120_v31  ;;  %v1276_v36 = vmax.f32 %v1118_v26, 0.0 }
 0x20d   : > { %v1279_v35 = vmax.f32 %v1129_v30, 0.0 }
 0x20e   : > { %v1277_v37 = vmax.f32 %v1121_v33, 0.0 }
 0x20f   : > { %v1325_v38 = vpack.c.bf16 %v1279_v35, %v1278_v34 }
 0x210   : > { %v1324_v42 = vpack.c.bf16 %v1277_v37, %v1276_v36  ;;  %v2761_v32 = vpop.f32.mrb[68].mxu1 }
 0x211   : > { %v1142_v60 = vadd.f32 %v2761_v32, %v3471_v29  ;;  %v1133_v63 = vpop.f32.mrb[69].mxu1 }
 0x212   : > { %v1134_v24 = vadd.f32 %v3471_v29, %v1133_v63  ;;  %v2762_v27 = vpop.f32.mrb[70].mxu1  ;;  %2835 = vmatprep.mubr.bf16.mxu0 %v1324_v42 }
 0x213   : > { %v1145_v55 = vadd.f32 %v2762_v27, %v3471_v29  ;;  %v1136_v58 = vpop.f32.mrb[71].mxu1  ;;  %2836 = vmatmul.mubr.bf16.gmra.mrb[64].mxu0 %v1325_v38  ;;  %v1282_v25 = vmax.f32 %v1142_v60, 0.0 }
 0x214   : > { %v1137_v21 = vadd.f32 %v3471_v29, %v1136_v58  ;;  %v1280_v40 = vmax.f32 %v1134_v24, 0.0 }
 0x215   : > { %v1283_v39 = vmax.f32 %v1145_v55, 0.0 }
 0x216   : > { %v1281_v41 = vmax.f32 %v1137_v21, 0.0 }
 0x217   : > { %v1327_v43 = vpack.c.bf16 %v1283_v39, %v1282_v25 }
 0x218   : > { %v1326_v44 = vpack.c.bf16 %v1281_v41, %v1280_v40  ;;  %v2765_v45 = vpop.f32.mrb[72].mxu1 }
 0x219   : > { %v1158_v46 = vadd.f32 %v2765_v45, %v3471_v29  ;;  %v1149_v47 = vpop.f32.mrb[73].mxu1 }
 0x21a   : > { %v1150_v48 = vadd.f32 %v3471_v29, %v1149_v47  ;;  %v2766_v49 = vpop.f32.mrb[74].mxu1  ;;  %2839 = vmatprep.mubr.bf16.mxu0 %v1326_v44 }
 0x21b   : > { %v1161_v50 = vadd.f32 %v2766_v49, %v3471_v29  ;;  %v1152_v51 = vpop.f32.mrb[75].mxu1  ;;  %2840 = vmatmul.mubr.bf16.gmra.mrb[68].mxu0 %v1327_v43  ;;  %v1286_v53 = vmax.f32 %v1158_v46, 0.0 }
 0x21c   : > { %v1153_v52 = vadd.f32 %v3471_v29, %v1152_v51  ;;  %v1284_v56 = vmax.f32 %v1150_v48, 0.0 }
 0x21d   : > { %v1287_v54 = vmax.f32 %v1161_v50, 0.0 }
 0x21e   : > { %v1285_v57 = vmax.f32 %v1153_v52, 0.0 }
 0x21f   : > { %v1329_v59 = vpack.c.bf16 %v1287_v54, %v1286_v53 }
 0x220   : > { %v1328_v61 = vpack.c.bf16 %v1285_v57, %v1284_v56  ;;  %v2769_v62 = vpop.f32.mrb[76].mxu1 }
 0x221   : > { %v1174_v0 = vadd.f32 %v2769_v62, %v3471_v29  ;;  %v1165_v1 = vpop.f32.mrb[77].mxu1 }
 0x222   : > { %v1166_v2 = vadd.f32 %v3471_v29, %v1165_v1  ;;  %v2770_v3 = vpop.f32.mrb[78].mxu1  ;;  %2843 = vmatprep.mubr.bf16.mxu0 %v1328_v61 }
 0x223   : > { %v1177_v4 = vadd.f32 %v2770_v3, %v3471_v29  ;;  %v1168_v5 = vpop.f32.mrb[79].mxu1  ;;  %2844 = vmatmul.mubr.bf16.gmra.mrb[72].mxu0 %v1329_v59  ;;  %v1290_v7 = vmax.f32 %v1174_v0, 0.0 }
 0x224   : > { %v1169_v6 = vadd.f32 %v3471_v29, %v1168_v5  ;;  %v1288_v9 = vmax.f32 %v1166_v2, 0.0 }
 0x225   : > { %v1291_v8 = vmax.f32 %v1177_v4, 0.0 }
 0x226   : > { %v1289_v10 = vmax.f32 %v1169_v6, 0.0  ;;  %v3540_v6 = vld [vmem:[%s4262_s6] ss:$0 sm:$0xff] }
 0x227   : > { %v1331_v11 = vpack.c.bf16 %v1291_v8, %v1290_v7 }
 0x228   : > { %v1330_v12 = vpack.c.bf16 %v1289_v10, %v1288_v9  ;;  %v2773_v13 = vpop.f32.mrb[80].mxu1 }
 0x229   : > { %v1190_v14 = vadd.f32 %v2773_v13, %v3471_v29  ;;  %v1181_v15 = vpop.f32.mrb[81].mxu1 }
 0x22a   : > { %v1182_v16 = vadd.f32 %v3471_v29, %v1181_v15  ;;  %v2774_v17 = vpop.f32.mrb[82].mxu1  ;;  %2847 = vmatprep.mubr.bf16.mxu0 %v1330_v12 }
 0x22b   : > { %v1193_v18 = vadd.f32 %v2774_v17, %v3471_v29  ;;  %v1184_v19 = vpop.f32.mrb[83].mxu1  ;;  %2848 = vmatmul.mubr.bf16.gmra.mrb[76].mxu0 %v1331_v11  ;;  %v1294_v22 = vmax.f32 %v1190_v14, 0.0 }
 0x22c   : > { %v1185_v20 = vadd.f32 %v3471_v29, %v1184_v19  ;;  %v1292_v26 = vmax.f32 %v1182_v16, 0.0 }
 0x22d   : > { %v1295_v23 = vmax.f32 %v1193_v18, 0.0 }
 0x22e   : > { %v1293_v28 = vmax.f32 %v1185_v20, 0.0 }
 0x22f   : > { %v1333_v30 = vpack.c.bf16 %v1295_v23, %v1294_v22 }
 0x230   : > { %v1332_v31 = vpack.c.bf16 %v1293_v28, %v1292_v26  ;;  %v2777_v33 = vpop.f32.mrb[84].mxu1 }
 0x231   : > { %v1206_v34 = vadd.f32 %v2777_v33, %v3471_v29  ;;  %v1197_v35 = vpop.f32.mrb[85].mxu1 }
 0x232   : > { %v1198_v36 = vadd.f32 %v3471_v29, %v1197_v35  ;;  %v2778_v37 = vpop.f32.mrb[86].mxu1  ;;  %2851 = vmatprep.mubr.bf16.mxu0 %v1332_v31 }
 0x233   : > { %v1209_v38 = vadd.f32 %v2778_v37, %v3471_v29  ;;  %v1200_v42 = vpop.f32.mrb[87].mxu1  ;;  %2852 = vmatmul.mubr.bf16.gmra.mrb[80].mxu0 %v1333_v30  ;;  %v1298_v60 = vmax.f32 %v1206_v34, 0.0 }
 0x234   : > { %v1201_v32 = vadd.f32 %v3471_v29, %v1200_v42  ;;  %v1296_v24 = vmax.f32 %v1198_v36, 0.0 }
 0x235   : > { %v1299_v63 = vmax.f32 %v1209_v38, 0.0 }
 0x236   : > { %v1297_v27 = vmax.f32 %v1201_v32, 0.0 }
 0x237   : > { %v1335_v55 = vpack.c.bf16 %v1299_v63, %v1298_v60 }
 0x238   : > { %v1334_v58 = vpack.c.bf16 %v1297_v27, %v1296_v24  ;;  %v2781_v21 = vpop.f32.mrb[88].mxu1 }
 0x239   : > { %v1222_v25 = vadd.f32 %v2781_v21, %v3471_v29  ;;  %v1213_v39 = vpop.f32.mrb[89].mxu1 }
 0x23a   : > { %v1214_v40 = vadd.f32 %v3471_v29, %v1213_v39  ;;  %v2782_v41 = vpop.f32.mrb[90].mxu1  ;;  %2855 = vmatprep.mubr.bf16.mxu0 %v1334_v58 }
 0x23b   : > { %v1225_v43 = vadd.f32 %v2782_v41, %v3471_v29  ;;  %v1216_v44 = vpop.f32.mrb[91].mxu1  ;;  %2856 = vmatmul.mubr.bf16.gmra.mrb[84].mxu0 %v1335_v55  ;;  %v1302_v46 = vmax.f32 %v1222_v25, 0.0 }
 0x23c   : > { %v1217_v45 = vadd.f32 %v3471_v29, %v1216_v44  ;;  %v1300_v48 = vmax.f32 %v1214_v40, 0.0 }
 0x23d   : > { %v1303_v47 = vmax.f32 %v1225_v43, 0.0 }
 0x23e   : > { %v1301_v49 = vmax.f32 %v1217_v45, 0.0 }
 0x23f   : > { %v1337_v50 = vpack.c.bf16 %v1303_v47, %v1302_v46 }
 0x240   : > { %v1336_v51 = vpack.c.bf16 %v1301_v49, %v1300_v48  ;;  %v2785_v52 = vpop.f32.mrb[92].mxu1 }
 0x241   : > { %v1238_v53 = vadd.f32 %v2785_v52, %v3471_v29  ;;  %v1229_v54 = vpop.f32.mrb[93].mxu1 }
 0x242   : > { %v1230_v56 = vadd.f32 %v3471_v29, %v1229_v54  ;;  %v2786_v57 = vpop.f32.mrb[94].mxu1  ;;  %2859 = vmatprep.mubr.bf16.mxu0 %v1336_v51 }
 0x243   : > { %v1241_v59 = vadd.f32 %v2786_v57, %v3471_v29  ;;  %v1232_v61 = vpop.f32.mrb[95].mxu1  ;;  %2860 = vmatmul.mubr.bf16.gmra.mrb[88].mxu0 %v1337_v50  ;;  %v1306_v0 = vmax.f32 %v1238_v53, 0.0 }
 0x244   : > { %v1233_v62 = vadd.f32 %v3471_v29, %v1232_v61  ;;  %v1304_v2 = vmax.f32 %v1230_v56, 0.0 }
 0x245   : > { %v1307_v1 = vmax.f32 %v1241_v59, 0.0 }
 0x246   : > { %v1305_v3 = vmax.f32 %v1233_v62, 0.0 }
 0x247   : > { %v1339_v4 = vpack.c.bf16 %v1307_v1, %v1306_v0 }
 0x248   : > { %v1338_v5 = vpack.c.bf16 %v1305_v3, %v1304_v2 }
 0x24a   : > { %2863 = vmatprep.mubr.bf16.mxu0 %v1338_v5 }
 0x24b   : > { %2864 = vmatmul.mubr.bf16.gmra.mrb[92].mxu0 %v1339_v4 }
 0x2a6   : > { %v2805_v7 = vpop.f32.mrb[32].mxu0 }
 0x2a7   : > { %v3543_v8 = vadd.f32 %v2805_v7, %v3540_v6  ;;  %v1445_v9 = vpop.f32.mrb[33].mxu0 }
 0x2a8   : > { %v3546_v29 = vadd.f32 %v3540_v6, %v1445_v9  ;;  %v2806_v10 = vpop.f32.mrb[34].mxu0 }
 0x2a9   : > { %1704 = vmax.xlane.f32.xlu1 %v3543_v8  ;;  %v1448_v11 = vpop.f32.mrb[35].mxu0  ;;  %v3551_v12 = vadd.f32 %v2806_v10, %v3540_v6 }
 0x2aa   : > { %1700 = vmax.xlane.f32.xlu0 %v3546_v29  ;;  %v3554_v13 = vadd.f32 %v3540_v6, %v1448_v11 }
 0x2ad   : > { %1706 = vmax.xlane.f32.xlu1 %v3551_v12 }
 0x2ae   : > { %v2809_v14 = vpop.f32.mrb[36].mxu0  ;;  %1702 = vmax.xlane.f32.xlu0 %v3554_v13 }
 0x2af   : > { %v3559_v15 = vadd.f32 %v2809_v14, %v3540_v6  ;;  %v1461_v16 = vpop.f32.mrb[37].mxu0 }
 0x2b0   : > { %v2810_v17 = vpop.f32.mrb[38].mxu0  ;;  %v3567_v20 = vadd.f32 %v3540_v6, %v1461_v16 }
 0x2b1   : > { %v3562_v18 = vadd.f32 %v2810_v17, %v3540_v6  ;;  %v1464_v19 = vpop.f32.mrb[39].mxu0 }
 0x2b2   : > { %1712 = vmax.xlane.f32.xlu0 %v3559_v15  ;;  %v3570_v22 = vadd.f32 %v3540_v6, %v1464_v19 }
 0x2b3   : > { %1714 = vmax.xlane.f32.xlu1 %v3562_v18 }
 0x2b6   : > { %v2813_v23 = vpop.f32.mrb[40].mxu0  ;;  %1708 = vmax.xlane.f32.xlu0 %v3567_v20 }
 0x2b7   : > { %v3574_v26 = vadd.f32 %v2813_v23, %v3540_v6  ;;  %v1477_v28 = vpop.f32.mrb[41].mxu0  ;;  %1710 = vmax.xlane.f32.xlu1 %v3570_v22 }
 0x2b8   : > { %v2814_v30 = vpop.f32.mrb[42].mxu0  ;;  %v3583_v34 = vadd.f32 %v3540_v6, %v1477_v28 }
 0x2b9   : > { %v3578_v31 = vadd.f32 %v2814_v30, %v3540_v6  ;;  %v1480_v33 = vpop.f32.mrb[43].mxu0 }
 0x2ba   : > { %1720 = vmax.xlane.f32.xlu0 %v3574_v26  ;;  %v3586_v35 = vadd.f32 %v3540_v6, %v1480_v33 }
 0x2bb   : > { %1722 = vmax.xlane.f32.xlu1 %v3578_v31 }
 0x2be   : > { %v2817_v36 = vpop.f32.mrb[44].mxu0  ;;  %1716 = vmax.xlane.f32.xlu0 %v3583_v34 }
 0x2bf   : > { %v3590_v37 = vadd.f32 %v2817_v36, %v3540_v6  ;;  %v1493_v38 = vpop.f32.mrb[45].mxu0  ;;  %1718 = vmax.xlane.f32.xlu1 %v3586_v35 }
 0x2c0   : > { %v2818_v42 = vpop.f32.mrb[46].mxu0  ;;  %v3599_v63 = vadd.f32 %v3540_v6, %v1493_v38 }
 0x2c1   : > { %v3594_v32 = vadd.f32 %v2818_v42, %v3540_v6  ;;  %v1496_v60 = vpop.f32.mrb[47].mxu0 }
 0x2c2   : > { %1728 = vmax.xlane.f32.xlu0 %v3590_v37  ;;  %v3602_v24 = vadd.f32 %v3540_v6, %v1496_v60 }
 0x2c3   : > { %1730 = vmax.xlane.f32.xlu1 %v3594_v32 }
 0x2c6   : > { %v2821_v27 = vpop.f32.mrb[48].mxu0  ;;  %1724 = vmax.xlane.f32.xlu0 %v3599_v63 }
 0x2c7   : > { %v3606_v55 = vadd.f32 %v2821_v27, %v3540_v6  ;;  %v1509_v58 = vpop.f32.mrb[49].mxu0  ;;  %1726 = vmax.xlane.f32.xlu1 %v3602_v24 }
 0x2c8   : > { %v2822_v21 = vpop.f32.mrb[50].mxu0  ;;  %v3615_v40 = vadd.f32 %v3540_v6, %v1509_v58 }
 0x2c9   : > { %v3610_v25 = vadd.f32 %v2822_v21, %v3540_v6  ;;  %v1512_v39 = vpop.f32.mrb[51].mxu0 }
 0x2ca   : > { %1736 = vmax.xlane.f32.xlu0 %v3606_v55  ;;  %v3618_v41 = vadd.f32 %v3540_v6, %v1512_v39 }
 0x2cb   : > { %1738 = vmax.xlane.f32.xlu1 %v3610_v25 }
 0x2ce   : > { %v2825_v43 = vpop.f32.mrb[52].mxu0  ;;  %1732 = vmax.xlane.f32.xlu0 %v3615_v40 }
 0x2cf   : > { %v3622_v44 = vadd.f32 %v2825_v43, %v3540_v6  ;;  %v1525_v45 = vpop.f32.mrb[53].mxu0  ;;  %1734 = vmax.xlane.f32.xlu1 %v3618_v41 }
 0x2d0   : > { %v2826_v46 = vpop.f32.mrb[54].mxu0  ;;  %v3631_v49 = vadd.f32 %v3540_v6, %v1525_v45 }
 0x2d1   : > { %v3626_v47 = vadd.f32 %v2826_v46, %v3540_v6  ;;  %v1528_v48 = vpop.f32.mrb[55].mxu0 }
 0x2d2   : > { %1744 = vmax.xlane.f32.xlu0 %v3622_v44  ;;  %v3634_v50 = vadd.f32 %v3540_v6, %v1528_v48 }
 0x2d3   : > { %1746 = vmax.xlane.f32.xlu1 %v3626_v47 }
 0x2d6   : > { %v2829_v51 = vpop.f32.mrb[56].mxu0  ;;  %1740 = vmax.xlane.f32.xlu0 %v3631_v49 }
 0x2d7   : > { %v3638_v52 = vadd.f32 %v2829_v51, %v3540_v6  ;;  %v1541_v53 = vpop.f32.mrb[57].mxu0  ;;  %1742 = vmax.xlane.f32.xlu1 %v3634_v50 }
 0x2d8   : > { %v2830_v54 = vpop.f32.mrb[58].mxu0  ;;  %v3647_v59 = vadd.f32 %v3540_v6, %v1541_v53 }
 0x2d9   : > { %v3642_v56 = vadd.f32 %v2830_v54, %v3540_v6  ;;  %v1544_v57 = vpop.f32.mrb[59].mxu0 }
 0x2da   : > { %1752 = vmax.xlane.f32.xlu0 %v3638_v52  ;;  %v3650_v61 = vadd.f32 %v3540_v6, %v1544_v57 }
 0x2db   : > { %1754 = vmax.xlane.f32.xlu1 %v3642_v56 }
 0x2de   : > { %v2833_v62 = vpop.f32.mrb[60].mxu0  ;;  %1748 = vmax.xlane.f32.xlu0 %v3647_v59 }
 0x2df   : > { %v3654_v0 = vadd.f32 %v2833_v62, %v3540_v6  ;;  %v1557_v1 = vpop.f32.mrb[61].mxu0  ;;  %1750 = vmax.xlane.f32.xlu1 %v3650_v61 }
 0x2e0   : > { %v2834_v2 = vpop.f32.mrb[62].mxu0  ;;  %v3663_v5 = vadd.f32 %v3540_v6, %v1557_v1 }
 0x2e1   : > { %v3658_v3 = vadd.f32 %v2834_v2, %v3540_v6  ;;  %v1560_v4 = vpop.f32.mrb[63].mxu0 }
 0x2e2   : > { %1760 = vmax.xlane.f32.xlu0 %v3654_v0  ;;  %v3666_v7 = vadd.f32 %v3540_v6, %v1560_v4 }
 0x2e3   : > { %1762 = vmax.xlane.f32.xlu1 %v3658_v3 }
 0x2e6   : > { %v2837_v9 = vpop.f32.mrb[64].mxu0  ;;  %1756 = vmax.xlane.f32.xlu0 %v3663_v5 }
 0x2e7   : > { %v3670_v10 = vadd.f32 %v2837_v9, %v3540_v6  ;;  %v1573_v11 = vpop.f32.mrb[65].mxu0  ;;  %1758 = vmax.xlane.f32.xlu1 %v3666_v7 }
 0x2e8   : > { %v2838_v14 = vpop.f32.mrb[66].mxu0  ;;  %v3679_v19 = vadd.f32 %v3540_v6, %v1573_v11 }
 0x2e9   : > { %v3674_v16 = vadd.f32 %v2838_v14, %v3540_v6  ;;  %v1576_v17 = vpop.f32.mrb[67].mxu0 }
 0x2ea   : > { %1768 = vmax.xlane.f32.xlu0 %v3670_v10  ;;  %v3682_v23 = vadd.f32 %v3540_v6, %v1576_v17 }
 0x2eb   : > { %1770 = vmax.xlane.f32.xlu1 %v3674_v16 }
 0x2ee   : > { %v2841_v28 = vpop.f32.mrb[68].mxu0  ;;  %1764 = vmax.xlane.f32.xlu0 %v3679_v19 }
 0x2ef   : > { %v3686_v30 = vadd.f32 %v2841_v28, %v3540_v6  ;;  %v1589_v33 = vpop.f32.mrb[69].mxu0  ;;  %1766 = vmax.xlane.f32.xlu1 %v3682_v23 }
 0x2f0   : > { %v2842_v36 = vpop.f32.mrb[70].mxu0  ;;  %v3695_v60 = vadd.f32 %v3540_v6, %v1589_v33 }
 0x2f1   : > { %v3690_v38 = vadd.f32 %v2842_v36, %v3540_v6  ;;  %v1592_v42 = vpop.f32.mrb[71].mxu0 }
 0x2f2   : > { %1776 = vmax.xlane.f32.xlu0 %v3686_v30  ;;  %v3698_v27 = vadd.f32 %v3540_v6, %v1592_v42 }
 0x2f3   : > { %1778 = vmax.xlane.f32.xlu1 %v3690_v38 }
 0x2f6   : > { %v2845_v58 = vpop.f32.mrb[72].mxu0  ;;  %1772 = vmax.xlane.f32.xlu0 %v3695_v60 }
 0x2f7   : > { %v3702_v21 = vadd.f32 %v2845_v58, %v3540_v6  ;;  %v1605_v39 = vpop.f32.mrb[73].mxu0  ;;  %1774 = vmax.xlane.f32.xlu1 %v3698_v27 }
 0x2f8   : > { %v2846_v43 = vpop.f32.mrb[74].mxu0  ;;  %v3711_v48 = vadd.f32 %v3540_v6, %v1605_v39 }
 0x2f9   : > { %v3706_v45 = vadd.f32 %v2846_v43, %v3540_v6  ;;  %v1608_v46 = vpop.f32.mrb[75].mxu0 }
 0x2fa   : > { %1784 = vmax.xlane.f32.xlu0 %v3702_v21  ;;  %v3714_v51 = vadd.f32 %v3540_v6, %v1608_v46 }
 0x2fb   : > { %1786 = vmax.xlane.f32.xlu1 %v3706_v45 }
 0x2fe   : > { %v2849_v53 = vpop.f32.mrb[76].mxu0  ;;  %1780 = vmax.xlane.f32.xlu0 %v3711_v48 }
 0x2ff   : > { %v3718_v54 = vadd.f32 %v2849_v53, %v3540_v6  ;;  %v1621_v57 = vpop.f32.mrb[77].mxu0  ;;  %1782 = vmax.xlane.f32.xlu1 %v3714_v51 }
 0x300   : > { %v2850_v62 = vpop.f32.mrb[78].mxu0  ;;  %v3727_v4 = vadd.f32 %v3540_v6, %v1621_v57 }
 0x301   : > { %v3722_v1 = vadd.f32 %v2850_v62, %v3540_v6  ;;  %v1624_v2 = vpop.f32.mrb[79].mxu0 }
 0x302   : > { %1792 = vmax.xlane.f32.xlu0 %v3718_v54  ;;  %v3730_v9 = vadd.f32 %v3540_v6, %v1624_v2 }
 0x303   : > { %1794 = vmax.xlane.f32.xlu1 %v3722_v1 }
 0x306   : > { %v2853_v11 = vpop.f32.mrb[80].mxu0  ;;  %1788 = vmax.xlane.f32.xlu0 %v3727_v4 }
 0x307   : > { %v3734_v14 = vadd.f32 %v2853_v11, %v3540_v6  ;;  %v1637_v17 = vpop.f32.mrb[81].mxu0  ;;  %1790 = vmax.xlane.f32.xlu1 %v3730_v9 }
 0x308   : > { %v2854_v28 = vpop.f32.mrb[82].mxu0  ;;  %v3743_v42 = vadd.f32 %v3540_v6, %v1637_v17 }
 0x309   : > { %v3738_v33 = vadd.f32 %v2854_v28, %v3540_v6  ;;  %v1640_v36 = vpop.f32.mrb[83].mxu0 }
 0x30a   : > { %1800 = vmax.xlane.f32.xlu0 %v3734_v14  ;;  %v3746_v58 = vadd.f32 %v3540_v6, %v1640_v36 }
 0x30b   : > { %1802 = vmax.xlane.f32.xlu1 %v3738_v33 }
 0x30e   : > { %v2857_v39 = vpop.f32.mrb[84].mxu0  ;;  %1796 = vmax.xlane.f32.xlu0 %v3743_v42 }
 0x30f   : > { %v3750_v43 = vadd.f32 %v2857_v39, %v3540_v6  ;;  %v1653_v46 = vpop.f32.mrb[85].mxu0  ;;  %1798 = vmax.xlane.f32.xlu1 %v3746_v58 }
 0x310   : > { %v2858_v53 = vpop.f32.mrb[86].mxu0  ;;  %v3759_v2 = vadd.f32 %v3540_v6, %v1653_v46 }
 0x311   : > { %v3754_v57 = vadd.f32 %v2858_v53, %v3540_v6  ;;  %v1656_v62 = vpop.f32.mrb[87].mxu0 }
 0x312   : > { %1808 = vmax.xlane.f32.xlu0 %v3750_v43  ;;  %4289 = vst [vmem:[#allocation3_spill] sm:$0xff] %v3759_v2  ;;  %v3762_v11 = vadd.f32 %v3540_v6, %v1656_v62 }
 0x313   : > { %4288 = vst [vmem:[#allocation2_spill] sm:$0xff] %v3754_v57  ;;  %1810 = vmax.xlane.f32.xlu1 %v3754_v57 }
 0x314   : > { %4290 = vst [vmem:[#allocation4_spill] sm:$0xff] %v3762_v11 }
 0x316   : > { %v2861_v17 = vpop.f32.mrb[88].mxu0  ;;  %1804 = vmax.xlane.f32.xlu0 %v3759_v2 }
 0x317   : > { %v3766_v28 = vadd.f32 %v2861_v17, %v3540_v6  ;;  %v1669_v36 = vpop.f32.mrb[89].mxu0  ;;  %1806 = vmax.xlane.f32.xlu1 %v3762_v11 }
 0x318   : > { %v2862_v39 = vpop.f32.mrb[90].mxu0  ;;  %v3775_v46 = vadd.f32 %v3540_v6, %v1669_v36 }
 0x319   : > { %4291 = vst [vmem:[#allocation5_spill] sm:$0xff] %v3766_v28  ;;  %v3770_v53 = vadd.f32 %v2862_v39, %v3540_v6  ;;  %v1672_v57 = vpop.f32.mrb[91].mxu0 }
 0x31a   : > { %1816 = vmax.xlane.f32.xlu0 %v3766_v28  ;;  %4293 = vst [vmem:[#allocation7_spill] sm:$0xff] %v3775_v46  ;;  %v3778_v62 = vadd.f32 %v3540_v6, %v1672_v57 }
 0x31b   : > { %4292 = vst [vmem:[#allocation6_spill] sm:$0xff] %v3770_v53  ;;  %1818 = vmax.xlane.f32.xlu1 %v3770_v53 }
 0x31c   : > { %4294 = vst [vmem:[#allocation8_spill] sm:$0xff] %v3778_v62 }
 0x31e   : > { %v2865_v17 = vpop.f32.mrb[92].mxu0  ;;  %1812 = vmax.xlane.f32.xlu0 %v3775_v46 }
 0x31f   : > { %v3782_v11 = vadd.f32 %v2865_v17, %v3540_v6  ;;  %v1685_v2 = vpop.f32.mrb[93].mxu0  ;;  %1814 = vmax.xlane.f32.xlu1 %v3778_v62 }
 0x320   : > { %v2866_v39 = vpop.f32.mrb[94].mxu0  ;;  %v3791_v57 = vadd.f32 %v3540_v6, %v1685_v2 }
 0x321   : > { %4295 = vst [vmem:[#allocation9_spill] sm:$0xff] %v3782_v11  ;;  %v3786_v28 = vadd.f32 %v2866_v39, %v3540_v6  ;;  %v1688_v53 = vpop.f32.mrb[95].mxu0 }
 0x322   : > { %1824 = vmax.xlane.f32.xlu0 %v3782_v11  ;;  %v3794_v36 = vadd.f32 %v3540_v6, %v1688_v53 }
 0x323   : > { %4296 = vst [vmem:[#allocation10_spill] sm:$0xff] %v3786_v28  ;;  %1826 = vmax.xlane.f32.xlu1 %v3786_v28 }
 0x324   : > { %4297 = vst [vmem:[#allocation11_spill] sm:$0xff] %v3794_v36 }
 0x326   : > { %1820 = vmax.xlane.f32.xlu0 %v3791_v57 }
 0x327   : > { %1822 = vmax.xlane.f32.xlu1 %v3794_v36 }
 0x336   : > { %v1705_v17 = vpop.xlane.xlu1 %1704 }
 0x337   : > { %v3799_v62 = vsub.f32 %v3543_v8, %v1705_v17  ;;  %v1701_v39 = vpop.xlane.xlu0 %1700 }
 0x338   : > { %v3802_v46 = vsub.f32 %v3546_v29, %v1701_v39 }
 0x339   : > { %v1896_v28 = vmul.f32 1.442695, %v3799_v62 }
 0x33a   : > { %4298 = vst [vmem:[#allocation12_spill] sm:$0xff] %v3802_v46  ;;  %v1892_v2 = vmul.f32 1.442695, %v3802_v46  ;;  %v1707_v11 = vpop.xlane.xlu1 %1706 }
 0x33b   : > { %2897 = vpow2.f32 %v1896_v28  ;;  %v3807_v6 = vsub.f32 %v3551_v12, %v1707_v11  ;;  %v1703_v53 = vpop.xlane.xlu0 %1702 }
 0x33c   : > { %v3810_v36 = vsub.f32 %v3554_v13, %v1703_v53  ;;  %2899 = vpow2.f32 %v1892_v2 }
 0x33d   : > { %v1898_v8 = vmul.f32 1.442695, %v3807_v6 }
 0x33e   : > { %4299 = vst [vmem:[#allocation13_spill] sm:$0xff] %v3810_v36  ;;  %v1894_v29 = vmul.f32 1.442695, %v3810_v36 }
 0x33f   : > { %2901 = vpow2.f32 %v1898_v8  ;;  %v1713_v17 = vpop.xlane.xlu0 %1712 }
 0x340   : > { %v3815_v39 = vsub.f32 %v3559_v15, %v1713_v17  ;;  %v1715_v46 = vpop.xlane.xlu1 %1714  ;;  %2903 = vpow2.f32 %v1894_v29 }
 0x341   : > { %v3818_v28 = vsub.f32 %v3562_v18, %v1715_v46 }
 0x342   : > { %v1904_v12 = vmul.f32 1.442695, %v3815_v39 }
 0x343   : > { %v1906_v13 = vmul.f32 1.442695, %v3818_v28  ;;  %v1709_v11 = vpop.xlane.xlu0 %1708 }
 0x344   : > { %2905 = vpow2.f32 %v1904_v12  ;;  %v3823_v2 = vsub.f32 %v3567_v20, %v1709_v11  ;;  %v1711_v53 = vpop.xlane.xlu1 %1710 }
 0x345   : > { %v2898_v8 = vpop.eup %2897  ;;  %v3826_v36 = vsub.f32 %v3570_v22, %v1711_v53  ;;  %2907 = vpow2.f32 %v1906_v13 }
 0x346   : > { %v1900_v15 = vmul.f32 1.442695, %v3823_v2  ;;  %2024 = vadd.xlane.f32.xlu0 %v2898_v8  ;;  %v2900_v29 = vpop.eup %2899 }
 0x347   : > { %4300 = vst [vmem:[#allocation14_spill] sm:$0xff] %v3826_v36  ;;  %v1902_v18 = vmul.f32 1.442695, %v3826_v36  ;;  %v1721_v46 = vpop.xlane.xlu0 %1720 }
 0x348   : > { %2909 = vpow2.f32 %v1900_v15  ;;  %v3831_v17 = vsub.f32 %v3574_v26, %v1721_v46  ;;  %v1723_v12 = vpop.xlane.xlu1 %1722 }
 0x349   : > { %v2902_v20 = vpop.eup %2901  ;;  %v3834_v11 = vsub.f32 %v3578_v31, %v1723_v12  ;;  %2911 = vpow2.f32 %v1902_v18 }
 0x34a   : > { %v1912_v22 = vmul.f32 1.442695, %v3831_v17  ;;  %2026 = vadd.xlane.f32.xlu1 %v2902_v20  ;;  %2020 = vadd.xlane.f32.xlu0 %v2900_v29  ;;  %v2904_v26 = vpop.eup %2903 }
 0x34b   : > { %v1914_v13 = vmul.f32 1.442695, %v3834_v11  ;;  %v1717_v53 = vpop.xlane.xlu0 %1716 }
 0x34c   : > { %2913 = vpow2.f32 %v1912_v22  ;;  %v3839_v8 = vsub.f32 %v3583_v34, %v1717_v53  ;;  %v1719_v15 = vpop.xlane.xlu1 %1718 }
 0x34d   : > { %v3842_v46 = vsub.f32 %v3586_v35, %v1719_v15  ;;  %2915 = vpow2.f32 %v1914_v13 }
 0x34e   : > { %v2906_v36 = vpop.eup %2905  ;;  %v1908_v31 = vmul.f32 1.442695, %v3839_v8  ;;  %2022 = vadd.xlane.f32.xlu1 %v2904_v26 }
 0x34f   : > { %v1910_v29 = vmul.f32 1.442695, %v3842_v46  ;;  %2032 = vadd.xlane.f32.xlu0 %v2906_v36  ;;  %v1729_v18 = vpop.xlane.xlu0 %1728  ;;  %v2908_v20 = vpop.eup %2907 }
 0x350   : > { %2917 = vpow2.f32 %v1908_v31  ;;  %v3847_v12 = vsub.f32 %v3590_v37, %v1729_v18  ;;  %v1731_v34 = vpop.xlane.xlu1 %1730 }
 0x351   : > { %v3850_v22 = vsub.f32 %v3594_v32, %v1731_v34  ;;  %2919 = vpow2.f32 %v1910_v29 }
 0x352   : > { %v2910_v35 = vpop.eup %2909  ;;  %v1920_v53 = vmul.f32 1.442695, %v3847_v12  ;;  %2034 = vadd.xlane.f32.xlu1 %v2908_v20 }
 0x353   : > { %v1922_v13 = vmul.f32 1.442695, %v3850_v22  ;;  %2028 = vadd.xlane.f32.xlu0 %v2910_v35  ;;  %v1725_v15 = vpop.xlane.xlu0 %1724  ;;  %v2912_v26 = vpop.eup %2911 }
 0x354   : > { %2921 = vpow2.f32 %v1920_v53  ;;  %v3855_v36 = vsub.f32 %v3599_v63, %v1725_v15  ;;  %v1727_v37 = vpop.xlane.xlu1 %1726 }
 0x355   : > { %v3858_v31 = vsub.f32 %v3602_v24, %v1727_v37  ;;  %2923 = vpow2.f32 %v1922_v13 }
 0x356   : > { %v2914_v32 = vpop.eup %2913  ;;  %v1916_v18 = vmul.f32 1.442695, %v3855_v36  ;;  %2030 = vadd.xlane.f32.xlu1 %v2912_v26 }
 0x357   : > { %v1918_v29 = vmul.f32 1.442695, %v3858_v31  ;;  %2040 = vadd.xlane.f32.xlu0 %v2914_v32  ;;  %v1737_v34 = vpop.xlane.xlu0 %1736  ;;  %v2916_v35 = vpop.eup %2915 }
 0x358   : > { %2925 = vpow2.f32 %v1916_v18  ;;  %v3863_v20 = vsub.f32 %v3606_v55, %v1737_v34  ;;  %v1739_v63 = vpop.xlane.xlu1 %1738 }
 0x359   : > { %v3866_v53 = vsub.f32 %v3610_v25, %v1739_v63  ;;  %2927 = vpow2.f32 %v1918_v29 }
 0x35a   : > { %v2918_v24 = vpop.eup %2917  ;;  %v1928_v15 = vmul.f32 1.442695, %v3863_v20  ;;  %2042 = vadd.xlane.f32.xlu1 %v2916_v35 }
 0x35b   : > { %v1930_v13 = vmul.f32 1.442695, %v3866_v53  ;;  %2036 = vadd.xlane.f32.xlu0 %v2918_v24  ;;  %v1733_v37 = vpop.xlane.xlu0 %1732  ;;  %v2920_v32 = vpop.eup %2919 }
 0x35c   : > { %2929 = vpow2.f32 %v1928_v15  ;;  %v3871_v26 = vsub.f32 %v3615_v40, %v1733_v37  ;;  %v1735_v55 = vpop.xlane.xlu1 %1734 }
 0x35d   : > { %v3874_v18 = vsub.f32 %v3618_v41, %v1735_v55  ;;  %2931 = vpow2.f32 %v1930_v13 }
 0x35e   : > { %v2922_v25 = vpop.eup %2921  ;;  %v1924_v34 = vmul.f32 1.442695, %v3871_v26  ;;  %2038 = vadd.xlane.f32.xlu1 %v2920_v32 }
 0x35f   : > { %v1926_v29 = vmul.f32 1.442695, %v3874_v18  ;;  %2048 = vadd.xlane.f32.xlu0 %v2922_v25  ;;  %v1745_v63 = vpop.xlane.xlu0 %1744  ;;  %v2924_v24 = vpop.eup %2923 }
 0x360   : > { %2933 = vpow2.f32 %v1924_v34  ;;  %v3879_v35 = vsub.f32 %v3622_v44, %v1745_v63  ;;  %v1747_v40 = vpop.xlane.xlu1 %1746 }
 0x361   : > { %v3882_v15 = vsub.f32 %v3626_v47, %v1747_v40  ;;  %2935 = vpow2.f32 %v1926_v29 }
 0x362   : > { %v2926_v41 = vpop.eup %2925  ;;  %v1936_v37 = vmul.f32 1.442695, %v3879_v35  ;;  %2050 = vadd.xlane.f32.xlu1 %v2924_v24 }
 0x363   : > { %v1938_v13 = vmul.f32 1.442695, %v3882_v15  ;;  %2044 = vadd.xlane.f32.xlu0 %v2926_v41  ;;  %v1741_v55 = vpop.xlane.xlu0 %1740  ;;  %v2928_v25 = vpop.eup %2927 }
 0x364   : > { %2937 = vpow2.f32 %v1936_v37  ;;  %v3887_v32 = vsub.f32 %v3631_v49, %v1741_v55  ;;  %v1743_v44 = vpop.xlane.xlu1 %1742 }
 0x365   : > { %v3890_v34 = vsub.f32 %v3634_v50, %v1743_v44  ;;  %2939 = vpow2.f32 %v1938_v13 }
 0x366   : > { %v2930_v47 = vpop.eup %2929  ;;  %v1932_v63 = vmul.f32 1.442695, %v3887_v32  ;;  %2046 = vadd.xlane.f32.xlu1 %v2928_v25 }
 0x367   : > { %v1934_v29 = vmul.f32 1.442695, %v3890_v34  ;;  %2056 = vadd.xlane.f32.xlu0 %v2930_v47  ;;  %v1753_v40 = vpop.xlane.xlu0 %1752  ;;  %v2932_v41 = vpop.eup %2931 }
 0x368   : > { %2941 = vpow2.f32 %v1932_v63  ;;  %v3895_v24 = vsub.f32 %v3638_v52, %v1753_v40  ;;  %v1755_v49 = vpop.xlane.xlu1 %1754 }
 0x369   : > { %v3898_v37 = vsub.f32 %v3642_v56, %v1755_v49  ;;  %2943 = vpow2.f32 %v1934_v29 }
 0x36a   : > { %v2934_v50 = vpop.eup %2933  ;;  %v1944_v55 = vmul.f32 1.442695, %v3895_v24  ;;  %2058 = vadd.xlane.f32.xlu1 %v2932_v41 }
 0x36b   : > { %v1946_v13 = vmul.f32 1.442695, %v3898_v37  ;;  %2052 = vadd.xlane.f32.xlu0 %v2934_v50  ;;  %v1749_v44 = vpop.xlane.xlu0 %1748  ;;  %v2936_v47 = vpop.eup %2935 }
 0x36c   : > { %2945 = vpow2.f32 %v1944_v55  ;;  %v3903_v25 = vsub.f32 %v3647_v59, %v1749_v44  ;;  %v1751_v52 = vpop.xlane.xlu1 %1750 }
 0x36d   : > { %v3906_v63 = vsub.f32 %v3650_v61, %v1751_v52  ;;  %2947 = vpow2.f32 %v1946_v13 }
 0x36e   : > { %v2938_v56 = vpop.eup %2937  ;;  %v1940_v40 = vmul.f32 1.442695, %v3903_v25  ;;  %2054 = vadd.xlane.f32.xlu1 %v2936_v47 }
 0x36f   : > { %v1942_v29 = vmul.f32 1.442695, %v3906_v63  ;;  %2064 = vadd.xlane.f32.xlu0 %v2938_v56  ;;  %v1761_v49 = vpop.xlane.xlu0 %1760  ;;  %v2940_v50 = vpop.eup %2939 }
 0x370   : > { %2949 = vpow2.f32 %v1940_v40  ;;  %v3911_v41 = vsub.f32 %v3654_v0, %v1761_v49  ;;  %v1763_v59 = vpop.xlane.xlu1 %1762 }
 0x371   : > { %v3914_v55 = vsub.f32 %v3658_v3, %v1763_v59  ;;  %2951 = vpow2.f32 %v1942_v29 }
 0x372   : > { %v2942_v61 = vpop.eup %2941  ;;  %v1952_v44 = vmul.f32 1.442695, %v3911_v41  ;;  %2066 = vadd.xlane.f32.xlu1 %v2940_v50 }
 0x373   : > { %v1954_v13 = vmul.f32 1.442695, %v3914_v55  ;;  %2060 = vadd.xlane.f32.xlu0 %v2942_v61  ;;  %v1757_v52 = vpop.xlane.xlu0 %1756  ;;  %v2944_v56 = vpop.eup %2943 }
 0x374   : > { %2953 = vpow2.f32 %v1952_v44  ;;  %v3919_v47 = vsub.f32 %v3663_v5, %v1757_v52  ;;  %v1759_v0 = vpop.xlane.xlu1 %1758 }
 0x375   : > { %v3922_v40 = vsub.f32 %v3666_v7, %v1759_v0  ;;  %2955 = vpow2.f32 %v1954_v13 }
 0x376   : > { %v2946_v3 = vpop.eup %2945  ;;  %v1948_v49 = vmul.f32 1.442695, %v3919_v47  ;;  %2062 = vadd.xlane.f32.xlu1 %v2944_v56 }
 0x377   : > { %v1950_v29 = vmul.f32 1.442695, %v3922_v40  ;;  %2072 = vadd.xlane.f32.xlu0 %v2946_v3  ;;  %v1769_v59 = vpop.xlane.xlu0 %1768  ;;  %v2948_v61 = vpop.eup %2947 }
 0x378   : > { %2957 = vpow2.f32 %v1948_v49  ;;  %v3927_v50 = vsub.f32 %v3670_v10, %v1769_v59  ;;  %v1771_v5 = vpop.xlane.xlu1 %1770 }
 0x379   : > { %v3930_v44 = vsub.f32 %v3674_v16, %v1771_v5  ;;  %2959 = vpow2.f32 %v1950_v29 }
 0x37a   : > { %v2950_v7 = vpop.eup %2949  ;;  %v1960_v52 = vmul.f32 1.442695, %v3927_v50  ;;  %2074 = vadd.xlane.f32.xlu1 %v2948_v61 }
 0x37b   : > { %v1962_v13 = vmul.f32 1.442695, %v3930_v44  ;;  %2068 = vadd.xlane.f32.xlu0 %v2950_v7  ;;  %v1765_v0 = vpop.xlane.xlu0 %1764  ;;  %v2952_v3 = vpop.eup %2951 }
 0x37c   : > { %2961 = vpow2.f32 %v1960_v52  ;;  %v3935_v56 = vsub.f32 %v3679_v19, %v1765_v0  ;;  %v1767_v10 = vpop.xlane.xlu1 %1766 }
 0x37d   : > { %v3938_v49 = vsub.f32 %v3682_v23, %v1767_v10  ;;  %2963 = vpow2.f32 %v1962_v13 }
 0x37e   : > { %v2954_v16 = vpop.eup %2953  ;;  %v1956_v59 = vmul.f32 1.442695, %v3935_v56  ;;  %2070 = vadd.xlane.f32.xlu1 %v2952_v3 }
 0x37f   : > { %v1958_v29 = vmul.f32 1.442695, %v3938_v49  ;;  %2080 = vadd.xlane.f32.xlu0 %v2954_v16  ;;  %v1777_v5 = vpop.xlane.xlu0 %1776  ;;  %v2956_v7 = vpop.eup %2955 }
 0x380   : > { %2965 = vpow2.f32 %v1956_v59  ;;  %v3943_v61 = vsub.f32 %v3686_v30, %v1777_v5  ;;  %v1779_v19 = vpop.xlane.xlu1 %1778 }
 0x381   : > { %v3946_v52 = vsub.f32 %v3690_v38, %v1779_v19  ;;  %2967 = vpow2.f32 %v1958_v29 }
 0x382   : > { %v2958_v23 = vpop.eup %2957  ;;  %v1968_v0 = vmul.f32 1.442695, %v3943_v61  ;;  %2082 = vadd.xlane.f32.xlu1 %v2956_v7 }
 0x383   : > { %v1970_v13 = vmul.f32 1.442695, %v3946_v52  ;;  %2076 = vadd.xlane.f32.xlu0 %v2958_v23  ;;  %v1773_v10 = vpop.xlane.xlu0 %1772  ;;  %v2960_v16 = vpop.eup %2959 }
 0x384   : > { %2969 = vpow2.f32 %v1968_v0  ;;  %v3951_v3 = vsub.f32 %v3695_v60, %v1773_v10  ;;  %v1775_v30 = vpop.xlane.xlu1 %1774 }
 0x385   : > { %v3954_v59 = vsub.f32 %v3698_v27, %v1775_v30  ;;  %2971 = vpow2.f32 %v1970_v13 }
 0x386   : > { %v2962_v38 = vpop.eup %2961  ;;  %v1964_v5 = vmul.f32 1.442695, %v3951_v3  ;;  %2078 = vadd.xlane.f32.xlu1 %v2960_v16 }
 0x387   : > { %v1966_v29 = vmul.f32 1.442695, %v3954_v59  ;;  %2088 = vadd.xlane.f32.xlu0 %v2962_v38  ;;  %v1785_v19 = vpop.xlane.xlu0 %1784  ;;  %v2964_v23 = vpop.eup %2963 }
 0x388   : > { %2973 = vpow2.f32 %v1964_v5  ;;  %v3959_v7 = vsub.f32 %v3702_v21, %v1785_v19  ;;  %v1787_v60 = vpop.xlane.xlu1 %1786 }
 0x389   : > { %v3962_v0 = vsub.f32 %v3706_v45, %v1787_v60  ;;  %2975 = vpow2.f32 %v1966_v29 }
 0x38a   : > { %v2966_v27 = vpop.eup %2965  ;;  %v1976_v10 = vmul.f32 1.442695, %v3959_v7  ;;  %2090 = vadd.xlane.f32.xlu1 %v2964_v23 }
 0x38b   : > { %v1978_v13 = vmul.f32 1.442695, %v3962_v0  ;;  %2084 = vadd.xlane.f32.xlu0 %v2966_v27  ;;  %v1781_v30 = vpop.xlane.xlu0 %1780  ;;  %v2968_v38 = vpop.eup %2967 }
 0x38c   : > { %2977 = vpow2.f32 %v1976_v10  ;;  %v3967_v16 = vsub.f32 %v3711_v48, %v1781_v30  ;;  %v1783_v21 = vpop.xlane.xlu1 %1782 }
 0x38d   : > { %v3970_v5 = vsub.f32 %v3714_v51, %v1783_v21  ;;  %2979 = vpow2.f32 %v1978_v13 }
 0x38e   : > { %v2970_v45 = vpop.eup %2969  ;;  %v1972_v19 = vmul.f32 1.442695, %v3967_v16  ;;  %2086 = vadd.xlane.f32.xlu1 %v2968_v38 }
 0x38f   : > { %v1974_v29 = vmul.f32 1.442695, %v3970_v5  ;;  %2096 = vadd.xlane.f32.xlu0 %v2970_v45  ;;  %v1793_v60 = vpop.xlane.xlu0 %1792  ;;  %v2972_v27 = vpop.eup %2971 }
 0x390   : > { %2981 = vpow2.f32 %v1972_v19  ;;  %v3975_v23 = vsub.f32 %v3718_v54, %v1793_v60  ;;  %v1795_v48 = vpop.xlane.xlu1 %1794 }
 0x391   : > { %v3978_v10 = vsub.f32 %v3722_v1, %v1795_v48  ;;  %2983 = vpow2.f32 %v1974_v29 }
 0x392   : > { %v2974_v51 = vpop.eup %2973  ;;  %v1984_v30 = vmul.f32 1.442695, %v3975_v23  ;;  %2098 = vadd.xlane.f32.xlu1 %v2972_v27 }
 0x393   : > { %v1986_v13 = vmul.f32 1.442695, %v3978_v10  ;;  %2092 = vadd.xlane.f32.xlu0 %v2974_v51  ;;  %v1789_v21 = vpop.xlane.xlu0 %1788  ;;  %v2976_v45 = vpop.eup %2975 }
 0x394   : > { %2985 = vpow2.f32 %v1984_v30  ;;  %v3983_v38 = vsub.f32 %v3727_v4, %v1789_v21  ;;  %v1791_v54 = vpop.xlane.xlu1 %1790 }
 0x395   : > { %v3986_v19 = vsub.f32 %v3730_v9, %v1791_v54  ;;  %2987 = vpow2.f32 %v1986_v13 }
 0x396   : > { %v2978_v1 = vpop.eup %2977  ;;  %v1980_v60 = vmul.f32 1.442695, %v3983_v38  ;;  %2094 = vadd.xlane.f32.xlu1 %v2976_v45 }
 0x397   : > { %v1982_v29 = vmul.f32 1.442695, %v3986_v19  ;;  %2104 = vadd.xlane.f32.xlu0 %v2978_v1  ;;  %v1801_v48 = vpop.xlane.xlu0 %1800  ;;  %v2980_v51 = vpop.eup %2979 }
 0x398   : > { %2989 = vpow2.f32 %v1980_v60  ;;  %v3991_v27 = vsub.f32 %v3734_v14, %v1801_v48  ;;  %v1803_v4 = vpop.xlane.xlu1 %1802 }
 0x399   : > { %v3994_v30 = vsub.f32 %v3738_v33, %v1803_v4  ;;  %2991 = vpow2.f32 %v1982_v29 }
 0x39a   : > { %v2982_v9 = vpop.eup %2981  ;;  %v1992_v21 = vmul.f32 1.442695, %v3991_v27  ;;  %2106 = vadd.xlane.f32.xlu1 %v2980_v51 }
 0x39b   : > { %v1994_v13 = vmul.f32 1.442695, %v3994_v30  ;;  %2100 = vadd.xlane.f32.xlu0 %v2982_v9  ;;  %v1797_v54 = vpop.xlane.xlu0 %1796  ;;  %v2984_v1 = vpop.eup %2983 }
 0x39c   : > { %2993 = vpow2.f32 %v1992_v21  ;;  %v3999_v45 = vsub.f32 %v3743_v42, %v1797_v54  ;;  %v1799_v14 = vpop.xlane.xlu1 %1798  ;;  %v4304_v21 = vld [vmem:[#allocation2_spill] sm:$0xff] }
 0x39d   : > { %v4002_v60 = vsub.f32 %v3746_v58, %v1799_v14  ;;  %2995 = vpow2.f32 %v1994_v13 }
 0x39e   : > { %4301 = vst [vmem:[#allocation15_spill] sm:$0xff] %v3999_v45  ;;  %v2986_v33 = vpop.eup %2985  ;;  %v1988_v48 = vmul.f32 1.442695, %v3999_v45  ;;  %2102 = vadd.xlane.f32.xlu1 %v2984_v1 }
 0x39f   : > { %4302 = vst [vmem:[#allocation16_spill] sm:$0xff] %v4002_v60  ;;  %v1990_v29 = vmul.f32 1.442695, %v4002_v60  ;;  %2112 = vadd.xlane.f32.xlu0 %v2986_v33  ;;  %v1809_v4 = vpop.xlane.xlu0 %1808  ;;  %v2988_v9 = vpop.eup %2987  ;;  %v4306_v33 = vld [vmem:[#allocation3_spill] sm:$0xff]  ;;  %v4308_v60 = vld [vmem:[#allocation4_spill] sm:$0xff] }
 0x3a0   : > { %2997 = vpow2.f32 %v1988_v48  ;;  %v4007_v51 = vsub.f32 %v3750_v43, %v1809_v4  ;;  %v1811_v42 = vpop.xlane.xlu1 %1810 }
 0x3a1   : > { %v4010_v54 = vsub.f32 %v4304_v21, %v1811_v42  ;;  %2999 = vpow2.f32 %v1990_v29 }
 0x3a2   : > { %4303 = vst [vmem:[#allocation17_spill] sm:$0xff] %v4007_v51  ;;  %v2990_v58 = vpop.eup %2989  ;;  %v2000_v14 = vmul.f32 1.442695, %v4007_v51  ;;  %2114 = vadd.xlane.f32.xlu1 %v2988_v9 }
 0x3a3   : > { %4305 = vst [vmem:[#allocation2_spill] sm:$0xff] %v4010_v54  ;;  %v2002_v13 = vmul.f32 1.442695, %v4010_v54  ;;  %2108 = vadd.xlane.f32.xlu0 %v2990_v58  ;;  %v1805_v1 = vpop.xlane.xlu0 %1804  ;;  %v2992_v4 = vpop.eup %2991  ;;  %v4310_v58 = vld [vmem:[#allocation5_spill] sm:$0xff]  ;;  %v4312_v54 = vld [vmem:[#allocation6_spill] sm:$0xff] }
 0x3a4   : > { %3001 = vpow2.f32 %v2000_v14  ;;  %v4015_v48 = vsub.f32 %v4306_v33, %v1805_v1  ;;  %v1807_v43 = vpop.xlane.xlu1 %1806 }
 0x3a5   : > { %v4018_v45 = vsub.f32 %v4308_v60, %v1807_v43  ;;  %3003 = vpow2.f32 %v2002_v13 }
 0x3a6   : > { %4307 = vst [vmem:[#allocation3_spill] sm:$0xff] %v4015_v48  ;;  %v2994_v42 = vpop.eup %2993  ;;  %v1996_v21 = vmul.f32 1.442695, %v4015_v48  ;;  %2110 = vadd.xlane.f32.xlu1 %v2992_v4 }
 0x3a7   : > { %4309 = vst [vmem:[#allocation4_spill] sm:$0xff] %v4018_v45  ;;  %v1998_v29 = vmul.f32 1.442695, %v4018_v45  ;;  %2120 = vadd.xlane.f32.xlu0 %v2994_v42  ;;  %v1817_v9 = vpop.xlane.xlu0 %1816  ;;  %v2996_v33 = vpop.eup %2995  ;;  %v4314_v42 = vld [vmem:[#allocation7_spill] sm:$0xff]  ;;  %v4316_v45 = vld [vmem:[#allocation8_spill] sm:$0xff] }
 0x3a8   : > { %3005 = vpow2.f32 %v1996_v21  ;;  %v4023_v14 = vsub.f32 %v4310_v58, %v1817_v9  ;;  %v1819_v1 = vpop.xlane.xlu1 %1818 }
 0x3a9   : > { %v4026_v51 = vsub.f32 %v4312_v54, %v1819_v1  ;;  %3007 = vpow2.f32 %v1998_v29 }
 0x3aa   : > { %4311 = vst [vmem:[#allocation5_spill] sm:$0xff] %v4023_v14  ;;  %v2998_v60 = vpop.eup %2997  ;;  %v2008_v43 = vmul.f32 1.442695, %v4023_v14  ;;  %2122 = vadd.xlane.f32.xlu1 %v2996_v33 }
 0x3ab   : > { %4313 = vst [vmem:[#allocation6_spill] sm:$0xff] %v4026_v51  ;;  %v2010_v13 = vmul.f32 1.442695, %v4026_v51  ;;  %2116 = vadd.xlane.f32.xlu0 %v2998_v60  ;;  %v1813_v4 = vpop.xlane.xlu0 %1812  ;;  %v3000_v58 = vpop.eup %2999 }
 0x3ac   : > { %3009 = vpow2.f32 %v2008_v43  ;;  %v4031_v21 = vsub.f32 %v4314_v42, %v1813_v4  ;;  %v1815_v9 = vpop.xlane.xlu1 %1814  ;;  %v4318_v42 = vld [vmem:[#allocation9_spill] sm:$0xff] }
 0x3ad   : > { %v4034_v48 = vsub.f32 %v4316_v45, %v1815_v9  ;;  %3011 = vpow2.f32 %v2010_v13 }
 0x3ae   : > { %4315 = vst [vmem:[#allocation7_spill] sm:$0xff] %v4031_v21  ;;  %v3002_v54 = vpop.eup %3001  ;;  %v2004_v1 = vmul.f32 1.442695, %v4031_v21  ;;  %2118 = vadd.xlane.f32.xlu1 %v3000_v58  ;;  %v4319_v21 = vld [vmem:[#allocation10_spill] sm:$0xff] }
 0x3af   : > { %4317 = vst [vmem:[#allocation8_spill] sm:$0xff] %v4034_v48  ;;  %v2006_v29 = vmul.f32 1.442695, %v4034_v48  ;;  %2128 = vadd.xlane.f32.xlu0 %v3002_v54  ;;  %v1825_v33 = vpop.xlane.xlu0 %1824  ;;  %v3004_v43 = vpop.eup %3003  ;;  %v4321_v54 = vld [vmem:[#allocation11_spill] sm:$0xff] }
 0x3b0   : > { %3013 = vpow2.f32 %v2004_v1  ;;  %v1827_v60 = vpop.xlane.xlu1 %1826  ;;  %v4039_v45 = vsub.f32 %v4318_v42, %v1825_v33 }
 0x3b1   : > { %3015 = vpow2.f32 %v2006_v29  ;;  %v4045_v48 = vsub.f32 %v4319_v21, %v1827_v60 }
 0x3b2   : > { %v3006_v51 = vpop.eup %3005  ;;  %2130 = vadd.xlane.f32.xlu1 %v3004_v43  ;;  %v2016_v29 = vmul.f32 1.442695, %v4039_v45 }
 0x3b3   : > { %2124 = vadd.xlane.f32.xlu0 %v3006_v51  ;;  %v1821_v4 = vpop.xlane.xlu0 %1820  ;;  %v3008_v13 = vpop.eup %3007  ;;  %4320 = vst [vmem:[#allocation9_spill] sm:$0xff] %v4045_v48  ;;  %v2018_v33 = vmul.f32 1.442695, %v4045_v48 }
 0x3b4   : > { %v4042_v9 = vsub.f32 %v3791_v57, %v1821_v4  ;;  %v1823_v58 = vpop.xlane.xlu1 %1822 }
 0x3b5   : > { %v4048_v1 = vsub.f32 %v4321_v54, %v1823_v58 }
 0x3b6   : > { %v3010_v14 = vpop.eup %3009  ;;  %v2012_v43 = vmul.f32 1.442695, %v4042_v9  ;;  %2126 = vadd.xlane.f32.xlu1 %v3008_v13 }
 0x3b7   : > { %v2014_v51 = vmul.f32 1.442695, %v4048_v1  ;;  %2136 = vadd.xlane.f32.xlu0 %v3010_v14  ;;  %v3012_v57 = vpop.eup %3011 }
 0x3b8   : > { %3017 = vpow2.f32 %v2012_v43 }
 0x3b9   : > { %3019 = vpow2.f32 %v2014_v51 }
 0x3ba   : > { %v3014_v4 = vpop.eup %3013  ;;  %2138 = vadd.xlane.f32.xlu1 %v3012_v57  ;;  %3021 = vpow2.f32 %v2016_v29 }
 0x3bb   : > { %2132 = vadd.xlane.f32.xlu0 %v3014_v4  ;;  %v3016_v21 = vpop.eup %3015  ;;  %3023 = vpow2.f32 %v2018_v33 }
 0x3be   : > { %2134 = vadd.xlane.f32.xlu1 %v3016_v21 }
 0x3c2   : > { %v3018_v60 = vpop.eup %3017 }
 0x3c3   : > { %v3020_v42 = vpop.eup %3019  ;;  %2140 = vadd.xlane.f32.xlu0 %v3018_v60 }
 0x3c4   : > { %2142 = vadd.xlane.f32.xlu1 %v3020_v42  ;;  %v3022_v58 = vpop.eup %3021 }
 0x3c5   : > { %v3024_v14 = vpop.eup %3023 }
 0x3c7   : > { %2144 = vadd.xlane.f32.xlu0 %v3022_v58 }
 0x3c8   : > { %2146 = vadd.xlane.f32.xlu1 %v3024_v14 }
 0x3d3   : > { %v2025_v13 = vpop.xlane.xlu0 %2024 }
 0x3d4   : > { %3025 = vlog2.f32 %v2025_v13 }
 0x3d7   : > { %v2027_v54 = vpop.xlane.xlu1 %2026  ;;  %v2021_v43 = vpop.xlane.xlu0 %2020 }
 0x3d8   : > { %3027 = vlog2.f32 %v2027_v54 }
 0x3d9   : > { %3029 = vlog2.f32 %v2021_v43 }
 0x3db   : > { %v2023_v51 = vpop.xlane.xlu1 %2022 }
 0x3dc   : > { %3031 = vlog2.f32 %v2023_v51  ;;  %v2033_v29 = vpop.xlane.xlu0 %2032 }
 0x3dd   : > { %3033 = vlog2.f32 %v2033_v29 }
 0x3de   : > { %v3026_v57 = vpop.eup %3025 }
 0x3df   : > { %v2153_v33 = vmul.f32 0.6931472, %v3026_v57  ;;  %v2035_v4 = vpop.xlane.xlu1 %2034  ;;  %v4322_v57 = vld [vmem:[#allocation12_spill] sm:$0xff] }
 0x3e0   : > { %3035 = vlog2.f32 %v2035_v4  ;;  %v2029_v21 = vpop.xlane.xlu0 %2028 }
 0x3e1   : > { %v2278_v60 = vsub.f32 %v3799_v62, %v2153_v33  ;;  %3037 = vlog2.f32 %v2029_v21 }
 0x3e2   : > { %v3028_v42 = vpop.eup %3027 }
 0x3e3   : > { %v3030_v58 = vpop.eup %3029  ;;  %2343 = vst.msk [vmem:[%s4059_s12 + $0x10] sm:$0xff] %vm2340_vm1, %v2278_v60  ;;  %v2155_v14 = vmul.f32 0.6931472, %v3028_v42  ;;  %v2031_v13 = vpop.xlane.xlu1 %2030  ;;  %v4323_v42 = vld [vmem:[#allocation13_spill] sm:$0xff] }
 0x3e4   : > { %v2149_v54 = vmul.f32 0.6931472, %v3030_v58  ;;  %3039 = vlog2.f32 %v2031_v13  ;;  %v2041_v43 = vpop.xlane.xlu0 %2040 }
 0x3e5   : > { %v2279_v51 = vsub.f32 %v3807_v6, %v2155_v14  ;;  %3041 = vlog2.f32 %v2041_v43 }
 0x3e6   : > { %v3032_v29 = vpop.eup %3031  ;;  %v2276_v4 = vsub.f32 %v4322_v57, %v2149_v54 }
 0x3e7   : > { %v3034_v48 = vpop.eup %3033  ;;  %2344 = vst.msk [vmem:[%s4059_s12 + $0x18] sm:$0xff] %vm2340_vm1, %v2279_v51  ;;  %v2151_v62 = vmul.f32 0.6931472, %v3032_v29  ;;  %v2043_v33 = vpop.xlane.xlu1 %2042 }
 0x3e8   : > { %2341 = vst.msk [vmem:[%s4059_s12] sm:$0xff] %vm2340_vm1, %v2276_v4  ;;  %v2161_v21 = vmul.f32 0.6931472, %v3034_v48  ;;  %3043 = vlog2.f32 %v2043_v33  ;;  %v2037_v60 = vpop.xlane.xlu0 %2036 }
 0x3e9   : > { %v2277_v58 = vsub.f32 %v4323_v42, %v2151_v62  ;;  %3045 = vlog2.f32 %v2037_v60  ;;  %v4324_v42 = vld [vmem:[#allocation14_spill] sm:$0xff] }
 0x3ea   : > { %v3036_v6 = vpop.eup %3035  ;;  %v2282_v14 = vsub.f32 %v3815_v39, %v2161_v21 }
 0x3eb   : > { %v3038_v13 = vpop.eup %3037  ;;  %2342 = vst.msk [vmem:[%s4059_s12 + $0x8] sm:$0xff] %vm2340_vm1, %v2277_v58  ;;  %v2163_v54 = vmul.f32 0.6931472, %v3036_v6  ;;  %v2039_v43 = vpop.xlane.xlu1 %2038 }
 0x3ec   : > { %2347 = vst.msk [vmem:[%s4059_s12 + $0x30] sm:$0xff] %vm2340_vm1, %v2282_v14  ;;  %v2157_v51 = vmul.f32 0.6931472, %v3038_v13  ;;  %3047 = vlog2.f32 %v2039_v43  ;;  %v2049_v48 = vpop.xlane.xlu0 %2048 }
 0x3ed   : > { %v2283_v29 = vsub.f32 %v3818_v28, %v2163_v54  ;;  %3049 = vlog2.f32 %v2049_v48 }
 0x3ee   : > { %v3040_v57 = vpop.eup %3039  ;;  %v2280_v4 = vsub.f32 %v3823_v2, %v2157_v51 }
 0x3ef   : > { %v3042_v62 = vpop.eup %3041  ;;  %2348 = vst.msk [vmem:[%s4059_s12 + $0x38] sm:$0xff] %vm2340_vm1, %v2283_v29  ;;  %v2159_v39 = vmul.f32 0.6931472, %v3040_v57  ;;  %v2051_v33 = vpop.xlane.xlu1 %2050 }
 0x3f0   : > { %2345 = vst.msk [vmem:[%s4059_s12 + $0x20] sm:$0xff] %vm2340_vm1, %v2280_v4  ;;  %v2169_v21 = vmul.f32 0.6931472, %v3042_v62  ;;  %3051 = vlog2.f32 %v2051_v33  ;;  %v2045_v60 = vpop.xlane.xlu0 %2044 }
 0x3f1   : > { %v2281_v58 = vsub.f32 %v4324_v42, %v2159_v39  ;;  %3053 = vlog2.f32 %v2045_v60 }
 0x3f2   : > { %v3044_v28 = vpop.eup %3043  ;;  %v2286_v6 = vsub.f32 %v3831_v17, %v2169_v21 }
 0x3f3   : > { %v3046_v14 = vpop.eup %3045  ;;  %2346 = vst.msk [vmem:[%s4059_s12 + $0x28] sm:$0xff] %vm2340_vm1, %v2281_v58  ;;  %v2171_v2 = vmul.f32 0.6931472, %v3044_v28  ;;  %v2047_v13 = vpop.xlane.xlu1 %2046 }
 0x3f4   : > { %2351 = vst.msk [vmem:[%s4059_s12 + $0x50] sm:$0xff] %vm2340_vm1, %v2286_v6  ;;  %v2165_v54 = vmul.f32 0.6931472, %v3046_v14  ;;  %3055 = vlog2.f32 %v2047_v13  ;;  %v2057_v43 = vpop.xlane.xlu0 %2056 }
 0x3f5   : > { %v2287_v51 = vsub.f32 %v3834_v11, %v2171_v2  ;;  %3057 = vlog2.f32 %v2057_v43 }
 0x3f6   : > { %v3048_v48 = vpop.eup %3047  ;;  %v2284_v29 = vsub.f32 %v3839_v8, %v2165_v54 }
 0x3f7   : > { %v3050_v57 = vpop.eup %3049  ;;  %2352 = vst.msk [vmem:[%s4059_s12 + $0x58] sm:$0xff] %vm2340_vm1, %v2287_v51  ;;  %v2167_v17 = vmul.f32 0.6931472, %v3048_v48  ;;  %v2059_v4 = vpop.xlane.xlu1 %2058 }
 0x3f8   : > { %2349 = vst.msk [vmem:[%s4059_s12 + $0x40] sm:$0xff] %vm2340_vm1, %v2284_v29  ;;  %v2177_v62 = vmul.f32 0.6931472, %v3050_v57  ;;  %3059 = vlog2.f32 %v2059_v4  ;;  %v2053_v39 = vpop.xlane.xlu0 %2052 }
 0x3f9   : > { %v2285_v33 = vsub.f32 %v3842_v46, %v2167_v17  ;;  %3061 = vlog2.f32 %v2053_v39 }
 0x3fa   : > { %v3052_v11 = vpop.eup %3051  ;;  %v2290_v21 = vsub.f32 %v3847_v12, %v2177_v62 }
 0x3fb   : > { %v3054_v60 = vpop.eup %3053  ;;  %2350 = vst.msk [vmem:[%s4059_s12 + $0x48] sm:$0xff] %vm2340_vm1, %v2285_v33  ;;  %v2179_v8 = vmul.f32 0.6931472, %v3052_v11  ;;  %v2055_v42 = vpop.xlane.xlu1 %2054 }
 0x3fc   : > { %2355 = vst.msk [vmem:[%s4059_s12 + $0x70] sm:$0xff] %vm2340_vm1, %v2290_v21  ;;  %v2173_v58 = vmul.f32 0.6931472, %v3054_v60  ;;  %3063 = vlog2.f32 %v2055_v42  ;;  %v2065_v28 = vpop.xlane.xlu0 %2064 }
 0x3fd   : > { %v2291_v6 = vsub.f32 %v3850_v22, %v2179_v8  ;;  %3065 = vlog2.f32 %v2065_v28 }
 0x3fe   : > { %v3056_v46 = vpop.eup %3055  ;;  %v2288_v14 = vsub.f32 %v3855_v36, %v2173_v58 }
 0x3ff   : > { %v3058_v2 = vpop.eup %3057  ;;  %2356 = vst.msk [vmem:[%s4059_s12 + $0x78] sm:$0xff] %vm2340_vm1, %v2291_v6  ;;  %v2175_v12 = vmul.f32 0.6931472, %v3056_v46  ;;  %v2067_v13 = vpop.xlane.xlu1 %2066 }
 0x400   : > { %2353 = vst.msk [vmem:[%s4059_s12 + $0x60] sm:$0xff] %vm2340_vm1, %v2288_v14  ;;  %v2185_v54 = vmul.f32 0.6931472, %v3058_v2  ;;  %3067 = vlog2.f32 %v2067_v13  ;;  %v2061_v43 = vpop.xlane.xlu0 %2060 }
 0x401   : > { %v2289_v51 = vsub.f32 %v3858_v31, %v2175_v12  ;;  %3069 = vlog2.f32 %v2061_v43 }
 0x402   : > { %v3060_v22 = vpop.eup %3059  ;;  %v2294_v48 = vsub.f32 %v3863_v20, %v2185_v54 }
 0x403   : > { %v3062_v29 = vpop.eup %3061  ;;  %2354 = vst.msk [vmem:[%s4059_s12 + $0x68] sm:$0xff] %vm2340_vm1, %v2289_v51  ;;  %v2187_v36 = vmul.f32 0.6931472, %v3060_v22  ;;  %v2063_v57 = vpop.xlane.xlu1 %2062 }
 0x404   : > { %2359 = vst.msk [vmem:[%s4059_s12 + $0x90] sm:$0xff] %vm2340_vm1, %v2294_v48  ;;  %v2181_v17 = vmul.f32 0.6931472, %v3062_v29  ;;  %3071 = vlog2.f32 %v2063_v57  ;;  %v2073_v4 = vpop.xlane.xlu0 %2072 }
 0x405   : > { %v2295_v62 = vsub.f32 %v3866_v53, %v2187_v36  ;;  %3073 = vlog2.f32 %v2073_v4 }
 0x406   : > { %v3064_v31 = vpop.eup %3063  ;;  %v2292_v39 = vsub.f32 %v3871_v26, %v2181_v17 }
 0x407   : > { %v3066_v33 = vpop.eup %3065  ;;  %2360 = vst.msk [vmem:[%s4059_s12 + $0x98] sm:$0xff] %vm2340_vm1, %v2295_v62  ;;  %v2183_v20 = vmul.f32 0.6931472, %v3064_v31  ;;  %v2075_v11 = vpop.xlane.xlu1 %2074 }
 0x408   : > { %2357 = vst.msk [vmem:[%s4059_s12 + $0x80] sm:$0xff] %vm2340_vm1, %v2292_v39  ;;  %v2193_v21 = vmul.f32 0.6931472, %v3066_v33  ;;  %3075 = vlog2.f32 %v2075_v11  ;;  %v2069_v60 = vpop.xlane.xlu0 %2068 }
 0x409   : > { %v2293_v8 = vsub.f32 %v3874_v18, %v2183_v20  ;;  %3077 = vlog2.f32 %v2069_v60 }
 0x40a   : > { %v3068_v53 = vpop.eup %3067  ;;  %v2298_v42 = vsub.f32 %v3879_v35, %v2193_v21 }
 0x40b   : > { %v3070_v58 = vpop.eup %3069  ;;  %2358 = vst.msk [vmem:[%s4059_s12 + $0x88] sm:$0xff] %vm2340_vm1, %v2293_v8  ;;  %v2195_v26 = vmul.f32 0.6931472, %v3068_v53  ;;  %v2071_v28 = vpop.xlane.xlu1 %2070 }
 0x40c   : > { %2363 = vst.msk [vmem:[%s4059_s12 + $0xb0] sm:$0xff] %vm2340_vm1, %v2298_v42  ;;  %v2189_v6 = vmul.f32 0.6931472, %v3070_v58  ;;  %3079 = vlog2.f32 %v2071_v28  ;;  %v2081_v46 = vpop.xlane.xlu0 %2080 }
 0x40d   : > { %v2299_v14 = vsub.f32 %v3882_v15, %v2195_v26  ;;  %3081 = vlog2.f32 %v2081_v46 }
 0x40e   : > { %v3072_v18 = vpop.eup %3071  ;;  %v2296_v2 = vsub.f32 %v3887_v32, %v2189_v6 }
 0x40f   : > { %v3074_v12 = vpop.eup %3073  ;;  %2364 = vst.msk [vmem:[%s4059_s12 + $0xb8] sm:$0xff] %vm2340_vm1, %v2299_v14  ;;  %v2191_v35 = vmul.f32 0.6931472, %v3072_v18  ;;  %v2083_v13 = vpop.xlane.xlu1 %2082 }
 0x410   : > { %2361 = vst.msk [vmem:[%s4059_s12 + $0xa0] sm:$0xff] %vm2340_vm1, %v2296_v2  ;;  %v2201_v54 = vmul.f32 0.6931472, %v3074_v12  ;;  %3083 = vlog2.f32 %v2083_v13  ;;  %v2077_v43 = vpop.xlane.xlu0 %2076 }
 0x411   : > { %v2297_v51 = vsub.f32 %v3890_v34, %v2191_v35  ;;  %3085 = vlog2.f32 %v2077_v43 }
 0x412   : > { %v3076_v15 = vpop.eup %3075  ;;  %v2302_v22 = vsub.f32 %v3895_v24, %v2201_v54 }
 0x413   : > { %v3078_v48 = vpop.eup %3077  ;;  %2362 = vst.msk [vmem:[%s4059_s12 + $0xa8] sm:$0xff] %vm2340_vm1, %v2297_v51  ;;  %v2203_v32 = vmul.f32 0.6931472, %v3076_v15  ;;  %v2079_v29 = vpop.xlane.xlu1 %2078 }
 0x414   : > { %2367 = vst.msk [vmem:[%s4059_s12 + $0xd0] sm:$0xff] %vm2340_vm1, %v2302_v22  ;;  %v2197_v36 = vmul.f32 0.6931472, %v3078_v48  ;;  %3087 = vlog2.f32 %v2079_v29  ;;  %v2089_v57 = vpop.xlane.xlu0 %2088 }
 0x415   : > { %v2303_v17 = vsub.f32 %v3898_v37, %v2203_v32  ;;  %3089 = vlog2.f32 %v2089_v57 }
 0x416   : > { %v3080_v34 = vpop.eup %3079  ;;  %v2300_v4 = vsub.f32 %v3903_v25, %v2197_v36 }
 0x417   : > { %v3082_v62 = vpop.eup %3081  ;;  %2368 = vst.msk [vmem:[%s4059_s12 + $0xd8] sm:$0xff] %vm2340_vm1, %v2303_v17  ;;  %v2199_v24 = vmul.f32 0.6931472, %v3080_v34  ;;  %v2091_v31 = vpop.xlane.xlu1 %2090 }
 0x418   : > { %2365 = vst.msk [vmem:[%s4059_s12 + $0xc0] sm:$0xff] %vm2340_vm1, %v2300_v4  ;;  %v2209_v39 = vmul.f32 0.6931472, %v3082_v62  ;;  %3091 = vlog2.f32 %v2091_v31  ;;  %v2085_v33 = vpop.xlane.xlu0 %2084 }
 0x419   : > { %v2301_v20 = vsub.f32 %v3906_v63, %v2199_v24  ;;  %3093 = vlog2.f32 %v2085_v33 }
 0x41a   : > { %v3084_v37 = vpop.eup %3083  ;;  %v2306_v11 = vsub.f32 %v3911_v41, %v2209_v39 }
 0x41b   : > { %v3086_v21 = vpop.eup %3085  ;;  %2366 = vst.msk [vmem:[%s4059_s12 + $0xc8] sm:$0xff] %vm2340_vm1, %v2301_v20  ;;  %v2211_v25 = vmul.f32 0.6931472, %v3084_v37  ;;  %v2087_v60 = vpop.xlane.xlu1 %2086 }
 0x41c   : > { %2371 = vst.msk [vmem:[%s4059_s12 + $0xf0] sm:$0xff] %vm2340_vm1, %v2306_v11  ;;  %v2205_v8 = vmul.f32 0.6931472, %v3086_v21  ;;  %3095 = vlog2.f32 %v2087_v60  ;;  %v2097_v53 = vpop.xlane.xlu0 %2096 }
 0x41d   : > { %v2307_v42 = vsub.f32 %v3914_v55, %v2211_v25  ;;  %3097 = vlog2.f32 %v2097_v53 }
 0x41e   : > { %v3088_v63 = vpop.eup %3087  ;;  %v2304_v58 = vsub.f32 %v3919_v47, %v2205_v8 }
 0x41f   : > { %v3090_v26 = vpop.eup %3089  ;;  %2372 = vst.msk [vmem:[%s4059_s12 + $0xf8] sm:$0xff] %vm2340_vm1, %v2307_v42  ;;  %v2207_v41 = vmul.f32 0.6931472, %v3088_v63  ;;  %v2099_v28 = vpop.xlane.xlu1 %2098 }
 0x420   : > { %2369 = vst.msk [vmem:[%s4059_s12 + $0xe0] sm:$0xff] %vm2340_vm1, %v2304_v58  ;;  %v2217_v6 = vmul.f32 0.6931472, %v3090_v26  ;;  %3099 = vlog2.f32 %v2099_v28  ;;  %v2093_v46 = vpop.xlane.xlu0 %2092 }
 0x421   : > { %v2305_v14 = vsub.f32 %v3922_v40, %v2207_v41  ;;  %3101 = vlog2.f32 %v2093_v46 }
 0x422   : > { %v3092_v55 = vpop.eup %3091  ;;  %v2310_v18 = vsub.f32 %v3927_v50, %v2217_v6 }
 0x423   : > { %v3094_v2 = vpop.eup %3093  ;;  %2370 = vst.msk [vmem:[%s4059_s12 + $0xe8] sm:$0xff] %vm2340_vm1, %v2305_v14  ;;  %v2219_v47 = vmul.f32 0.6931472, %v3092_v55  ;;  %v2095_v12 = vpop.xlane.xlu1 %2094 }
 0x424   : > { %2375 = vst.msk [vmem:[%s4059_s12 + $0x110] sm:$0xff] %vm2340_vm1, %v2310_v18  ;;  %v2213_v35 = vmul.f32 0.6931472, %v3094_v2  ;;  %3103 = vlog2.f32 %v2095_v12  ;;  %v2105_v13 = vpop.xlane.xlu0 %2104 }
 0x425   : > { %v2311_v54 = vsub.f32 %v3930_v44, %v2219_v47  ;;  %3105 = vlog2.f32 %v2105_v13 }
 0x426   : > { %v3096_v40 = vpop.eup %3095  ;;  %v2308_v43 = vsub.f32 %v3935_v56, %v2213_v35 }
 0x427   : > { %v3098_v51 = vpop.eup %3097  ;;  %2376 = vst.msk [vmem:[%s4059_s12 + $0x118] sm:$0xff] %vm2340_vm1, %v2311_v54  ;;  %v2215_v50 = vmul.f32 0.6931472, %v3096_v40  ;;  %v2107_v15 = vpop.xlane.xlu1 %2106 }
 0x428   : > { %2373 = vst.msk [vmem:[%s4059_s12 + $0x100] sm:$0xff] %vm2340_vm1, %v2308_v43  ;;  %v2225_v22 = vmul.f32 0.6931472, %v3098_v51  ;;  %3107 = vlog2.f32 %v2107_v15  ;;  %v2101_v48 = vpop.xlane.xlu0 %2100 }
 0x429   : > { %v2309_v32 = vsub.f32 %v3938_v49, %v2215_v50  ;;  %3109 = vlog2.f32 %v2101_v48  ;;  %v4325_v48 = vld [vmem:[#allocation15_spill] sm:$0xff] }
 0x42a   : > { %v3100_v44 = vpop.eup %3099  ;;  %v2314_v29 = vsub.f32 %v3943_v61, %v2225_v22 }
 0x42b   : > { %v3102_v36 = vpop.eup %3101  ;;  %2374 = vst.msk [vmem:[%s4059_s12 + $0x108] sm:$0xff] %vm2340_vm1, %v2309_v32  ;;  %v2227_v56 = vmul.f32 0.6931472, %v3100_v44  ;;  %v2103_v57 = vpop.xlane.xlu1 %2102 }
 0x42c   : > { %2379 = vst.msk [vmem:[%s4059_s12 + $0x130] sm:$0xff] %vm2340_vm1, %v2314_v29  ;;  %v2221_v17 = vmul.f32 0.6931472, %v3102_v36  ;;  %3111 = vlog2.f32 %v2103_v57  ;;  %v2113_v34 = vpop.xlane.xlu0 %2112  ;;  %v4326_v57 = vld [vmem:[#allocation16_spill] sm:$0xff] }
 0x42d   : > { %v2315_v4 = vsub.f32 %v3946_v52, %v2227_v56  ;;  %3113 = vlog2.f32 %v2113_v34  ;;  %v4327_v34 = vld [vmem:[#allocation17_spill] sm:$0xff] }
 0x42e   : > { %v3104_v49 = vpop.eup %3103  ;;  %v2312_v62 = vsub.f32 %v3951_v3, %v2221_v17 }
 0x42f   : > { %v3106_v24 = vpop.eup %3105  ;;  %2380 = vst.msk [vmem:[%s4059_s12 + $0x138] sm:$0xff] %vm2340_vm1, %v2315_v4  ;;  %v2223_v61 = vmul.f32 0.6931472, %v3104_v49  ;;  %v2115_v31 = vpop.xlane.xlu1 %2114 }
 0x430   : > { %2377 = vst.msk [vmem:[%s4059_s12 + $0x120] sm:$0xff] %vm2340_vm1, %v2312_v62  ;;  %v2233_v39 = vmul.f32 0.6931472, %v3106_v24  ;;  %3115 = vlog2.f32 %v2115_v31  ;;  %v2109_v33 = vpop.xlane.xlu0 %2108  ;;  %v4328_v31 = vld [vmem:[#allocation2_spill] sm:$0xff] }
 0x431   : > { %v2313_v20 = vsub.f32 %v3954_v59, %v2223_v61  ;;  %3117 = vlog2.f32 %v2109_v33 }
 0x432   : > { %v3108_v52 = vpop.eup %3107  ;;  %v2318_v37 = vsub.f32 %v3959_v7, %v2233_v39 }
 0x433   : > { %v3110_v11 = vpop.eup %3109  ;;  %2378 = vst.msk [vmem:[%s4059_s12 + $0x128] sm:$0xff] %vm2340_vm1, %v2313_v20  ;;  %v2235_v3 = vmul.f32 0.6931472, %v3108_v52  ;;  %v2111_v21 = vpop.xlane.xlu1 %2110  ;;  %v4329_v20 = vld [vmem:[#allocation3_spill] sm:$0xff] }
 0x434   : > { %2383 = vst.msk [vmem:[%s4059_s12 + $0x150] sm:$0xff] %vm2340_vm1, %v2318_v37  ;;  %v2229_v25 = vmul.f32 0.6931472, %v3110_v11  ;;  %3119 = vlog2.f32 %v2111_v21  ;;  %v2121_v60 = vpop.xlane.xlu0 %2120 }
 0x435   : > { %v2319_v8 = vsub.f32 %v3962_v0, %v2235_v3  ;;  %3121 = vlog2.f32 %v2121_v60 }
 0x436   : > { %v3112_v59 = vpop.eup %3111  ;;  %v2316_v53 = vsub.f32 %v3967_v16, %v2229_v25  ;;  %v4330_v25 = vld [vmem:[#allocation4_spill] sm:$0xff] }
 0x437   : > { %v3114_v42 = vpop.eup %3113  ;;  %2384 = vst.msk [vmem:[%s4059_s12 + $0x158] sm:$0xff] %vm2340_vm1, %v2319_v8  ;;  %v2231_v7 = vmul.f32 0.6931472, %v3112_v59  ;;  %v2123_v63 = vpop.xlane.xlu1 %2122 }
 0x438   : > { %2381 = vst.msk [vmem:[%s4059_s12 + $0x140] sm:$0xff] %vm2340_vm1, %v2316_v53  ;;  %v2241_v58 = vmul.f32 0.6931472, %v3114_v42  ;;  %3123 = vlog2.f32 %v2123_v63  ;;  %v2117_v26 = vpop.xlane.xlu0 %2116  ;;  %v4331_v53 = vld [vmem:[#allocation5_spill] sm:$0xff] }
 0x439   : > { %v2317_v41 = vsub.f32 %v3970_v5, %v2231_v7  ;;  %3125 = vlog2.f32 %v2117_v26 }
 0x43a   : > { %v3116_v0 = vpop.eup %3115  ;;  %v2322_v28 = vsub.f32 %v3975_v23, %v2241_v58 }
 0x43b   : > { %v3118_v6 = vpop.eup %3117  ;;  %2382 = vst.msk [vmem:[%s4059_s12 + $0x148] sm:$0xff] %vm2340_vm1, %v2317_v41  ;;  %v2243_v16 = vmul.f32 0.6931472, %v3116_v0  ;;  %v2119_v46 = vpop.xlane.xlu1 %2118  ;;  %v4332_v41 = vld [vmem:[#allocation6_spill] sm:$0xff] }
 0x43c   : > { %2387 = vst.msk [vmem:[%s4059_s12 + $0x170] sm:$0xff] %vm2340_vm1, %v2322_v28  ;;  %v2237_v14 = vmul.f32 0.6931472, %v3118_v6  ;;  %3127 = vlog2.f32 %v2119_v46  ;;  %v2129_v55 = vpop.xlane.xlu0 %2128 }
 0x43d   : > { %v2323_v18 = vsub.f32 %v3978_v10, %v2243_v16  ;;  %3129 = vlog2.f32 %v2129_v55  ;;  %v4333_v16 = vld [vmem:[#allocation7_spill] sm:$0xff]  ;;  %v4334_v55 = vld [vmem:[#allocation8_spill] sm:$0xff] }
 0x43e   : > { %v3120_v5 = vpop.eup %3119  ;;  %v2320_v2 = vsub.f32 %v3983_v38, %v2237_v14 }
 0x43f   : > { %v3122_v47 = vpop.eup %3121  ;;  %2388 = vst.msk [vmem:[%s4059_s12 + $0x178] sm:$0xff] %vm2340_vm1, %v2323_v18  ;;  %v2239_v23 = vmul.f32 0.6931472, %v3120_v5  ;;  %v2131_v12 = vpop.xlane.xlu1 %2130 }
 0x440   : > { %2385 = vst.msk [vmem:[%s4059_s12 + $0x160] sm:$0xff] %vm2340_vm1, %v2320_v2  ;;  %v2249_v35 = vmul.f32 0.6931472, %v3122_v47  ;;  %3131 = vlog2.f32 %v2131_v12  ;;  %v2125_v13 = vpop.xlane.xlu0 %2124 }
 0x441   : > { %v2321_v54 = vsub.f32 %v3986_v19, %v2239_v23  ;;  %3133 = vlog2.f32 %v2125_v13 }
 0x442   : > { %v3124_v10 = vpop.eup %3123  ;;  %v2326_v40 = vsub.f32 %v3991_v27, %v2249_v35 }
 0x443   : > { %v3126_v43 = vpop.eup %3125  ;;  %2386 = vst.msk [vmem:[%s4059_s12 + $0x168] sm:$0xff] %vm2340_vm1, %v2321_v54  ;;  %v2251_v38 = vmul.f32 0.6931472, %v3124_v10  ;;  %v2127_v51 = vpop.xlane.xlu1 %2126 }
 0x444   : > { %2391 = vst.msk [vmem:[%s4059_s12 + $0x190] sm:$0xff] %vm2340_vm1, %v2326_v40  ;;  %v2245_v50 = vmul.f32 0.6931472, %v3126_v43  ;;  %3135 = vlog2.f32 %v2127_v51  ;;  %v2137_v15 = vpop.xlane.xlu0 %2136 }
 0x445   : > { %v2327_v22 = vsub.f32 %v3994_v30, %v2251_v38  ;;  %3137 = vlog2.f32 %v2137_v15  ;;  %v4335_v38 = vld [vmem:[#allocation9_spill] sm:$0xff] }
 0x446   : > { %v3128_v19 = vpop.eup %3127  ;;  %v2324_v32 = vsub.f32 %v4325_v48, %v2245_v50 }
 0x447   : > { %v3130_v44 = vpop.eup %3129  ;;  %2392 = vst.msk [vmem:[%s4059_s12 + $0x198] sm:$0xff] %vm2340_vm1, %v2327_v22  ;;  %v2247_v27 = vmul.f32 0.6931472, %v3128_v19  ;;  %v2139_v29 = vpop.xlane.xlu1 %2138 }
 0x448   : > { %2389 = vst.msk [vmem:[%s4059_s12 + $0x180] sm:$0xff] %vm2340_vm1, %v2324_v32  ;;  %v2257_v36 = vmul.f32 0.6931472, %v3130_v44  ;;  %3139 = vlog2.f32 %v2139_v29  ;;  %v2133_v56 = vpop.xlane.xlu0 %2132 }
 0x449   : > { %v2325_v17 = vsub.f32 %v4326_v57, %v2247_v27  ;;  %3141 = vlog2.f32 %v2133_v56 }
 0x44a   : > { %v3132_v30 = vpop.eup %3131  ;;  %v2330_v4 = vsub.f32 %v4327_v34, %v2257_v36 }
 0x44b   : > { %v3134_v49 = vpop.eup %3133  ;;  %2390 = vst.msk [vmem:[%s4059_s12 + $0x188] sm:$0xff] %vm2340_vm1, %v2325_v17  ;;  %v2259_v62 = vmul.f32 0.6931472, %v3132_v30  ;;  %v2135_v24 = vpop.xlane.xlu1 %2134 }
 0x44c   : > { %2395 = vst.msk [vmem:[%s4059_s12 + $0x1b0] sm:$0xff] %vm2340_vm1, %v2330_v4  ;;  %v2253_v61 = vmul.f32 0.6931472, %v3134_v49  ;;  %3143 = vlog2.f32 %v2135_v24 }
 0x44d   : > { %v2331_v39 = vsub.f32 %v4328_v31, %v2259_v62 }
 0x44e   : > { %v3136_v33 = vpop.eup %3135  ;;  %v2328_v52 = vsub.f32 %v4329_v20, %v2253_v61 }
 0x44f   : > { %v3138_v37 = vpop.eup %3137  ;;  %2396 = vst.msk [vmem:[%s4059_s12 + $0x1b8] sm:$0xff] %vm2340_vm1, %v2331_v39  ;;  %v2255_v11 = vmul.f32 0.6931472, %v3136_v33 }
 0x450   : > { %2393 = vst.msk [vmem:[%s4059_s12 + $0x1a0] sm:$0xff] %vm2340_vm1, %v2328_v52  ;;  %v2265_v3 = vmul.f32 0.6931472, %v3138_v37  ;;  %v2141_v21 = vpop.xlane.xlu0 %2140 }
 0x451   : > { %v2329_v60 = vsub.f32 %v4330_v25, %v2255_v11  ;;  %3145 = vlog2.f32 %v2141_v21  ;;  %v2143_v8 = vpop.xlane.xlu1 %2142 }
 0x452   : > { %v3140_v59 = vpop.eup %3139  ;;  %v2334_v42 = vsub.f32 %v4331_v53, %v2265_v3  ;;  %3147 = vlog2.f32 %v2143_v8 }
 0x453   : > { %v3142_v7 = vpop.eup %3141  ;;  %2394 = vst.msk [vmem:[%s4059_s12 + $0x1a8] sm:$0xff] %vm2340_vm1, %v2329_v60  ;;  %v2267_v63 = vmul.f32 0.6931472, %v3140_v59 }
 0x454   : > { %2399 = vst.msk [vmem:[%s4059_s12 + $0x1d0] sm:$0xff] %vm2340_vm1, %v2334_v42  ;;  %v2261_v58 = vmul.f32 0.6931472, %v3142_v7  ;;  %v2145_v26 = vpop.xlane.xlu0 %2144 }
 0x455   : > { %v2335_v0 = vsub.f32 %v4332_v41, %v2267_v63  ;;  %3149 = vlog2.f32 %v2145_v26  ;;  %v2147_v28 = vpop.xlane.xlu1 %2146 }
 0x456   : > { %v3144_v6 = vpop.eup %3143  ;;  %v2332_v46 = vsub.f32 %v4333_v16, %v2261_v58  ;;  %3151 = vlog2.f32 %v2147_v28 }
 0x457   : > { %2400 = vst.msk [vmem:[%s4059_s12 + $0x1d8] sm:$0xff] %vm2340_vm1, %v2335_v0  ;;  %v2263_v14 = vmul.f32 0.6931472, %v3144_v6 }
 0x458   : > { %2397 = vst.msk [vmem:[%s4059_s12 + $0x1c0] sm:$0xff] %vm2340_vm1, %v2332_v46 }
 0x459   : > { %v2333_v18 = vsub.f32 %v4334_v55, %v2263_v14 }
 0x45b   : > { %v3146_v5 = vpop.eup %3145  ;;  %2398 = vst.msk [vmem:[%s4059_s12 + $0x1c8] sm:$0xff] %vm2340_vm1, %v2333_v18 }
 0x45c   : > { %v3148_v2 = vpop.eup %3147  ;;  %v2269_v47 = vmul.f32 0.6931472, %v3146_v5 }
 0x45d   : > { %v2271_v23 = vmul.f32 0.6931472, %v3148_v2 }
 0x45e   : > { %v2336_v12 = vsub.f32 %v4042_v9, %v2269_v47 }
 0x45f   : > { %v3150_v35 = vpop.eup %3149  ;;  %v2337_v13 = vsub.f32 %v4048_v1, %v2271_v23 }
 0x460   : > { %v3152_v54 = vpop.eup %3151  ;;  %2401 = vst.msk [vmem:[%s4059_s12 + $0x1e0] sm:$0xff] %vm2340_vm1, %v2336_v12  ;;  %v2273_v10 = vmul.f32 0.6931472, %v3150_v35 }
 0x461   : > { %2402 = vst.msk [vmem:[%s4059_s12 + $0x1e8] sm:$0xff] %vm2340_vm1, %v2337_v13  ;;  %v2275_v40 = vmul.f32 0.6931472, %v3152_v54 }
 0x462   : > { %v2338_v43 = vsub.f32 %v4039_v45, %v2273_v10 }
 0x463   : > { %v2339_v51 = vsub.f32 %v4335_v38, %v2275_v40 }
 0x464   : > { %2403 = vst.msk [vmem:[%s4059_s12 + $0x1f0] sm:$0xff] %vm2340_vm1, %v2338_v43 }
 0x465   : > { %2404 = vst.msk [vmem:[%s4059_s12 + $0x1f8] sm:$0xff] %vm2340_vm1, %v2339_v51 }
 0x466 PF: > { %s17_s24 = sadd.s32 1, %s3159_s24  }
 0x467   : > { %p14_p4 = scmp.ge.s32.totalorder %s17_s24, 6  }
 0x469   :  { %16 = sbr.rel (!%p14_p4) target bundleno = 1 (0x1), region = 78 }

</bundles_post_ra>
